<compile_context>
chip_gen: v6e
topology: v6e:2x2x1
jax: 0.10.0
libtpu: 0.0.40
codegen_flags: <defaults>
</compile_context>

<pallas_src>
import functools
import math

import jax
import jax.numpy as jnp
from jax.experimental import pallas as pl
from jax.experimental.pallas import tpu as pltpu


# --------------------------------------------------------------------------------------
# Kernel: one ResidualAttentionBlock per grid step; grid = (batch_tile, layer)
# --------------------------------------------------------------------------------------
def transformer_kernel(x_ref, wqkv_ref, wo_ref, wfc_ref, wpj_ref, vec_ref, o_ref,
                       *, n_head, mlp_chunks, kv_len, gelu_bf16):
    layer = pl.program_id(1)

    # Layer 0: bring the input activations into the (layer-resident) output block.
    @pl.when(layer == 0)
    def _():
        o_ref[...] = x_ref[...]

    Bt, S, D = o_ref.shape
    dff = wfc_ref.shape[2]
    hd = D // n_head
    eps = 1e-5

    # Packed small per-layer parameters: one DMA instead of ten.
    vec = vec_ref[0, 0]                                   # (9*D + dff,) float32
    ln1_g, ln1_b = vec[0:D], vec[D:2 * D]
    b_qkv = vec[2 * D:5 * D]                              # q part already carries 1/sqrt(hd)
    b_o = vec[5 * D:6 * D]
    ln2_g, ln2_b = vec[6 * D:7 * D], vec[7 * D:8 * D]
    b_fc = vec[8 * D:8 * D + dff]
    b_pj = vec[8 * D + dff:9 * D + dff]

    x = o_ref[...].astype(jnp.float32).reshape(Bt * S, D)

    def layernorm(v, g, b):
        # LayerNorm subclass always computes in float32 (matches the torch code).
        mu = jnp.mean(v, axis=-1, keepdims=True)
        var = jnp.mean((v - mu) ** 2, axis=-1, keepdims=True)
        return (v - mu) * jax.lax.rsqrt(var + eps) * g + b

    def split_heads(t):       # (Bt*S, D) f32 -> (Bt*H, S, hd) bf16 (MXU operand)
        t = jnp.transpose(t.reshape(Bt, S, n_head, hd), (0, 2, 1, 3))
        return t.reshape(Bt * n_head, S, hd).astype(jnp.bfloat16)

    # ---- multi-head self-attention branch ----
    h = layernorm(x, ln1_g, ln1_b).astype(jnp.bfloat16)   # single hoisted bf16 cast
    # Fused qkv projection: one MXU call with N = 3*D, f32 accumulation.
    # The 1/sqrt(hd) scale is folded into the q columns/bias at parameter-prep time.
    qkv = jnp.dot(h, wqkv_ref[0], preferred_element_type=jnp.float32) + b_qkv
    q = split_heads(qkv[:, :D])
    k = split_heads(qkv[:, D:2 * D])
    v = split_heads(qkv[:, 2 * D:])

    # TODO(synk): a transpose-free (Bt,S,H,hd) attention needs multi-batch-dim
    # dot_general support in Mosaic; keeping the proven single-batch-dim einsum.
    s = jnp.einsum('bqd,bkd->bqk', q, k, preferred_element_type=jnp.float32)
    if kv_len < S:                                        # static: mask zero-padded keys
        key_idx = jax.lax.broadcasted_iota(jnp.int32, s.shape, 2)
        s = jnp.where(key_idx < kv_len, s, -1e30)
    # attn_mask is None for this Transformer instantiation; an additive mask
    # would simply be added to `s` here.
    s = s - jnp.max(s, axis=-1, keepdims=True)
    p = jnp.exp(s)
    # Approx reciprocal runs on the EUP slot; rows sum to 1 within ~1e-3 (deliberate).
    p = p * pl.reciprocal(jnp.sum(p, axis=-1, keepdims=True), approx=True)
    ctx = jnp.einsum('bqk,bkd->bqd', p.astype(jnp.bfloat16), v,
                     preferred_element_type=jnp.float32)
    ctx = jnp.transpose(ctx.reshape(Bt, n_head, S, hd), (0, 2, 1, 3)).reshape(Bt * S, D)
    attn = jnp.dot(ctx.astype(jnp.bfloat16), wo_ref[0],
                   preferred_element_type=jnp.float32) + b_o
    x = x + attn

    # ---- MLP branch (c_fc -> QuickGELU -> c_proj), chunked along the 4*D hidden axis ----
    h = layernorm(x, ln2_g, ln2_b).astype(jnp.bfloat16)
    chunk = dff // mlp_chunks
    gelu_dt = jnp.bfloat16 if gelu_bf16 else jnp.float32
    mlp = None
    for c in range(mlp_chunks):                           # static unroll; chunk is lane-aligned
        lo, hi = c * chunk, (c + 1) * chunk
        hc = jnp.dot(h, wfc_ref[0, :, lo:hi],
                     preferred_element_type=jnp.float32) + b_fc[lo:hi]
        hc = hc.astype(gelu_dt)
        hc = (hc * jax.nn.sigmoid(1.702 * hc)).astype(jnp.bfloat16)   # QuickGELU
        part = jnp.dot(hc, wpj_ref[0, lo:hi, :], preferred_element_type=jnp.float32)
        mlp = part if mlp is None else mlp + part
    x = x + mlp + b_pj

    o_ref[...] = x.reshape(Bt, S, D).astype(o_ref.dtype)


# --------------------------------------------------------------------------------------
# Wrapper: VMEM-budget-driven tiling
# --------------------------------------------------------------------------------------
def _vmem_capacity_bytes():
    try:
        cap = getattr(pltpu.get_tpu_info(), "vmem_capacity_bytes", None)
        if cap:
            return int(cap)
    except Exception:
        pass
    return 64 << 20          # conservative fallback = v7x capacity


def _has_bf16_vpu():
    # v6e / v7x have bf16 VPU+EUP; keep QuickGELU in f32 on older generations.
    try:
        kind = jax.devices()[0].device_kind.lower()
        return not any(t in kind for t in ("v2", "v3", "v4", "v5"))
    except Exception:
        return True


def _pick_mlp_chunks(rows, dff, chunk_budget_bytes=4 << 20):
    """Number of lane-aligned column chunks for the (rows, 4*D) MLP hidden activation."""
    if dff % 128 != 0:
        return 1
    units = dff // 128
    for n in range(1, units + 1):
        if units % n == 0 and rows * (dff // n) * 4 <= chunk_budget_bytes:
            return n
    return units


def _footprint_bytes(bt, S, D, H, dff, per_layer_weight_bytes):
    rows = bt * S
    act = rows * D * 4                                    # one f32 (rows, D) tensor
    chunk = dff // _pick_mlp_chunks(rows, dff)
    scores = bt * H * S * S * 4                           # one f32 score tensor
    return int(2 * per_layer_weight_bytes                 # streamed weights, double-buffered
               + 13 * act                                 # io blocks + f32/bf16 temporaries
               + 2 * scores                               # scores + probabilities
               + rows * chunk * 6                         # MLP hidden chunk (f32 + bf16)
               + (8 << 20))                               # headroom for compiler temporaries


def _pick_batch_tile(B, S, D, H, dff, per_layer_weight_bytes, vmem_budget):
    divisors = [d for d in range(1, B + 1) if B % d == 0]
    fitting = [bt for bt in divisors
               if _footprint_bytes(bt, S, D, H, dff, per_layer_weight_bytes) <= vmem_budget]
    if not fitting:
        return 1                                          # smallest tile; nothing better to do
    multi = [bt for bt in fitting if B // bt >= 2]        # >=2 grid steps -> v7x 2-TC sharding
    for m_floor in (256, 128):                            # keep the MXU M dim (= Bt*S) filled
        good = [bt for bt in multi if bt * S >= m_floor]
        if good:
            return max(good)
    return max(fitting)                                   # batch truly tiny: keep M as large as possible


def transformer_pallas(x_bsd, packed_params, n_head, batch_tile=None):
    """x_bsd: (B, S, D). packed_params: (w_qkv, w_o, w_fc, w_pj, vec), leading layer dim."""
    B, S_real, D = x_bsd.shape
    assert D % n_head == 0
    # Pad S to a sublane multiple so the (Bt,S,D)->(Bt*S,D) flatten and head
    # reshapes stay (8,128)-tile aligned (pad keys are masked in-kernel).
    S = -(-S_real // 8) * 8
    if S != S_real:
        x_bsd = jnp.pad(x_bsd, ((0, 0), (0, S - S_real), (0, 0)))

    w_qkv, w_o, w_fc, w_pj, vec = packed_params
    n_layers = w_qkv.shape[0]
    dff = w_fc.shape[2]
    per_layer_weight_bytes = sum(int(p.size // p.shape[0]) * p.dtype.itemsize
                                 for p in packed_params)

    cap = _vmem_capacity_bytes()
    budget = cap - (8 << 20)                              # stay under physical VMEM
    Bt = batch_tile or _pick_batch_tile(B, S, D, n_head, dff, per_layer_weight_bytes, budget)
    assert B % Bt == 0
    mlp_chunks = _pick_mlp_chunks(Bt * S, dff)
    vmem_limit = int(max(min(_footprint_bytes(Bt, S, D, n_head, dff, per_layer_weight_bytes),
                             budget),
                         min(32 << 20, budget)))

    def w_spec(p):
        return pl.BlockSpec((1,) + p.shape[1:], lambda b, l: (l, 0, 0))

    # TODO(synk): the x input block could be single-buffered (it is only read at
    # layer 0); left default-buffered to keep the pipeline configuration proven.
    fn = pl.pallas_call(
        functools.partial(transformer_kernel, n_head=n_head, mlp_chunks=mlp_chunks,
                          kv_len=S_real, gelu_bf16=_has_bf16_vpu()),
        out_shape=jax.ShapeDtypeStruct((B, S, D), x_bsd.dtype),
        grid=(B // Bt, n_layers),
        in_specs=[pl.BlockSpec((Bt, S, D), lambda b, l: (b, 0, 0)),
                  w_spec(w_qkv), w_spec(w_o), w_spec(w_fc), w_spec(w_pj), w_spec(vec)],
        out_specs=pl.BlockSpec((Bt, S, D), lambda b, l: (b, 0, 0)),
        compiler_params=pltpu.CompilerParams(
            dimension_semantics=("parallel", "arbitrary"),
            vmem_limit_bytes=vmem_limit),
    )
    y = fn(x_bsd, w_qkv, w_o, w_fc, w_pj, vec)
    if S != S_real:
        y = y[:, :S_real, :]
    return y


def transformer_forward(x_lnd, packed_params, n_head):
    """x_lnd: (L, N, D) as in the PyTorch module. Returns (L, N, D)."""
    x = jnp.transpose(x_lnd, (1, 0, 2))                   # -> (B, S, D)
    y = transformer_pallas(x, packed_params, n_head)
    return jnp.transpose(y, (1, 0, 2))


# --------------------------------------------------------------------------------------
# Parameters: torch-like raw params, then kernel-friendly packing
# --------------------------------------------------------------------------------------
def init_raw_params(key, width, n_layers):
    """Per-layer f32 parameters in x @ W layout (i.e. transposed torch weights)."""
    D = width
    layers = []
    for l in range(n_layers):
        ks = jax.random.split(jax.random.fold_in(key, l), 8)
        layers.append(dict(
            ln1_g=jnp.ones((D,), jnp.float32), ln1_b=jnp.zeros((D,), jnp.float32),
            w_qkv=jax.random.normal(ks[0], (D, 3 * D), jnp.float32) * 0.02,
            b_qkv=jax.random.normal(ks[1], (3 * D,), jnp.float32) * 0.02,
            w_o=jax.random.normal(ks[2], (D, D), jnp.float32) * 0.02,
            b_o=jax.random.normal(ks[3], (D,), jnp.float32) * 0.02,
            ln2_g=jnp.ones((D,), jnp.float32), ln2_b=jnp.zeros((D,), jnp.float32),
            w_fc=jax.random.normal(ks[4], (D, 4 * D), jnp.float32) * 0.02,
            b_fc=jax.random.normal(ks[5], (4 * D,), jnp.float32) * 0.02,
            w_pj=jax.random.normal(ks[6], (4 * D, D), jnp.float32) * 0.02,
            b_pj=jax.random.normal(ks[7], (D,), jnp.float32) * 0.02,
        ))
    return layers


def pack_params(raw_layers, n_head):
    """Fold 1/sqrt(hd) into q, keep qkv fused, cast large weights to bf16, and pack
    the ten small per-layer vectors into one f32 array. Stack everything over layers."""
    D = raw_layers[0]['w_o'].shape[0]
    scale = 1.0 / math.sqrt(D // n_head)
    w_qkv_l, w_o_l, w_fc_l, w_pj_l, vec_l = [], [], [], [], []
    for p in raw_layers:
        w_qkv = p['w_qkv'].at[:, :D].multiply(scale)      # fold scale into q columns
        b_qkv = p['b_qkv'].at[:D].multiply(scale)
        vec = jnp.concatenate([p['ln1_g'], p['ln1_b'], b_qkv, p['b_o'],
                               p['ln2_g'], p['ln2_b'], p['b_fc'], p['b_pj']])
        w_qkv_l.append(w_qkv.astype(jnp.bfloat16))
        w_o_l.append(p['w_o'].astype(jnp.bfloat16))
        w_fc_l.append(p['w_fc'].astype(jnp.bfloat16))
        w_pj_l.append(p['w_pj'].astype(jnp.bfloat16))
        vec_l.append(vec.astype(jnp.float32)[None, :])    # (1, 9*D + 4*D)
    return (jnp.stack(w_qkv_l), jnp.stack(w_o_l), jnp.stack(w_fc_l),
            jnp.stack(w_pj_l), jnp.stack(vec_l))


# --------------------------------------------------------------------------------------
# Pure-JAX reference (f32, same stored parameters) for correctness
# --------------------------------------------------------------------------------------
def _ref_forward(x_lnd, packed_params, n_head):
    w_qkv_s, w_o_s, w_fc_s, w_pj_s, vec_s = packed_params
    x = jnp.transpose(x_lnd, (1, 0, 2)).astype(jnp.float32)
    B, S, D = x.shape
    dff = w_fc_s.shape[2]
    hd = D // n_head

    def ln(v, g, b):
        mu = jnp.mean(v, -1, keepdims=True)
        var = jnp.mean((v - mu) ** 2, -1, keepdims=True)
        return (v - mu) / jnp.sqrt(var + 1e-5) * g + b

    for l in range(w_qkv_s.shape[0]):
        w_qkv = w_qkv_s[l].astype(jnp.float32)
        w_o = w_o_s[l].astype(jnp.float32)
        w_fc = w_fc_s[l].astype(jnp.float32)
        w_pj = w_pj_s[l].astype(jnp.float32)
        vec = vec_s[l, 0]
        ln1_g, ln1_b = vec[:D], vec[D:2 * D]
        b_qkv = vec[2 * D:5 * D]
        b_o = vec[5 * D:6 * D]
        ln2_g, ln2_b = vec[6 * D:7 * D], vec[7 * D:8 * D]
        b_fc = vec[8 * D:8 * D + dff]
        b_pj = vec[8 * D + dff:9 * D + dff]

        h = ln(x, ln1_g, ln1_b)
        qkv = h @ w_qkv + b_qkv                           # 1/sqrt(hd) already folded into q
        q = qkv[..., :D].reshape(B, S, n_head, hd).transpose(0, 2, 1, 3)
        k = qkv[..., D:2 * D].reshape(B, S, n_head, hd).transpose(0, 2, 1, 3)
        v = qkv[..., 2 * D:].reshape(B, S, n_head, hd).transpose(0, 2, 1, 3)
        s = jnp.einsum('bhqd,bhkd->bhqk', q, k)
        pa = jax.nn.softmax(s, axis=-1)
        o = jnp.einsum('bhqk,bhkd->bhqd', pa, v).transpose(0, 2, 1, 3).reshape(B, S, D)
        x = x + (o @ w_o + b_o)
        h = ln(x, ln2_g, ln2_b)
        h = h @ w_fc + b_fc
        h = h * jax.nn.sigmoid(1.702 * h)
        x = x + (h @ w_pj + b_pj)
    return jnp.transpose(x, (1, 0, 2))


if __name__ == "__main__":
    # Small shapes consistent with the module: width=32, layers=2, heads=4,
    # sequence length 8, batch 2. Input layout (L, N, D) as in PyTorch.
    width, n_layers, heads = 32, 2, 4
    seq, batch = 8, 2

    key = jax.random.PRNGKey(0)
    k_x, k_p = jax.random.split(key)
    x = jax.random.normal(k_x, (seq, batch, width), jnp.float32)
    params = pack_params(init_raw_params(k_p, width, n_layers), heads)

    out = jax.block_until_ready(transformer_forward(x, params, heads))
    ref = _ref_forward(x, params, heads)

    assert out.shape == (seq, batch, width)
    max_err = float(jnp.max(jnp.abs(out - ref)))
    # bf16 matmul operands / bf16 QuickGELU + approx reciprocal -> slightly loose tolerance.
    assert jnp.allclose(out, ref, atol=2e-2, rtol=2e-2), f"mismatch vs reference (max err {max_err})"

    print("KERNEL_OK")
</pallas_src>

<mosaic_0001>
module attributes {stable_mosaic.version = 11 : i64} {
  func.func @transformer_kernel(%arg0: i32, %arg1: i32, %arg2: memref<2x8x32xf32, #tpu.memory_space<vmem>>, %arg3: memref<1x32x96xbf16, #tpu.memory_space<vmem>>, %arg4: memref<1x32x32xbf16, #tpu.memory_space<vmem>>, %arg5: memref<1x32x128xbf16, #tpu.memory_space<vmem>>, %arg6: memref<1x128x32xbf16, #tpu.memory_space<vmem>>, %arg7: memref<1x1x416xf32, #tpu.memory_space<vmem>>, %arg8: memref<2x8x32xf32, #tpu.memory_space<vmem>>) attributes {dimension_semantics = [#tpu.dimension_semantics<parallel>, #tpu.dimension_semantics<arbitrary>], iteration_bounds = array<i64: 1, 2>, scalar_prefetch = 0 : i64, scratch_operands = 0 : i64, tpu.core_type = #tpu.core_type<tc>, window_params = [{transform_indices = @transform_0, window_bounds = array<i64: 2, 8, 32>}, {transform_indices = @transform_1, window_bounds = array<i64: 1, 32, 96>}, {transform_indices = @transform_2, window_bounds = array<i64: 1, 32, 32>}, {transform_indices = @transform_3, window_bounds = array<i64: 1, 32, 128>}, {transform_indices = @transform_4, window_bounds = array<i64: 1, 128, 32>}, {transform_indices = @transform_5, window_bounds = array<i64: 1, 1, 416>}, {transform_indices = @transform_6, window_bounds = array<i64: 2, 8, 32>}]} {
    %c0_i32 = arith.constant 0 : i32
    %0 = arith.cmpi eq, %arg1, %c0_i32 : i32
    %1 = arith.extui %0 : i1 to i32
    %c0_i32_0 = arith.constant 0 : i32
    %2 = arith.cmpi ne, %1, %c0_i32_0 : i32
    scf.if %2 {
      %c0_40 = arith.constant 0 : index
      %c0_41 = arith.constant 0 : index
      %c0_42 = arith.constant 0 : index
      %134 = vector.load %arg2[%c0_40, %c0_41, %c0_42] : memref<2x8x32xf32, #tpu.memory_space<vmem>>, vector<2x8x32xf32>
      %c0_43 = arith.constant 0 : index
      %c0_44 = arith.constant 0 : index
      %c0_45 = arith.constant 0 : index
      %135 = vector.load %arg8[%c0_43, %c0_44, %c0_45] : memref<2x8x32xf32, #tpu.memory_space<vmem>>, vector<2x8x32xf32>
      tpu.vector_store %arg8[%c0_43, %c0_44, %c0_45], %134 {strides = array<i32>} : memref<2x8x32xf32, #tpu.memory_space<vmem>>, vector<2x8x32xf32>,
    } else {
    }
    %c0 = arith.constant 0 : index
    %c0_1 = arith.constant 0 : index
    %c0_2 = arith.constant 0 : index
    %3 = vector.load %arg7[%c0, %c0_1, %c0_2] : memref<1x1x416xf32, #tpu.memory_space<vmem>>, vector<1x1x416xf32>
    %4 = vector.shape_cast %3 : vector<1x1x416xf32> to vector<416xf32>
    %5 = vector.extract_strided_slice %4 {offsets = [0], sizes = [32], strides = [1]} : vector<416xf32> to vector<32xf32>
    %6 = vector.extract_strided_slice %4 {offsets = [32], sizes = [32], strides = [1]} : vector<416xf32> to vector<32xf32>
    %7 = vector.extract_strided_slice %4 {offsets = [64], sizes = [96], strides = [1]} : vector<416xf32> to vector<96xf32>
    %8 = vector.extract_strided_slice %4 {offsets = [160], sizes = [32], strides = [1]} : vector<416xf32> to vector<32xf32>
    %9 = vector.extract_strided_slice %4 {offsets = [192], sizes = [32], strides = [1]} : vector<416xf32> to vector<32xf32>
    %10 = vector.extract_strided_slice %4 {offsets = [224], sizes = [32], strides = [1]} : vector<416xf32> to vector<32xf32>
    %11 = vector.extract_strided_slice %4 {offsets = [256], sizes = [128], strides = [1]} : vector<416xf32> to vector<128xf32>
    %12 = vector.extract_strided_slice %4 {offsets = [384], sizes = [32], strides = [1]} : vector<416xf32> to vector<32xf32>
    %c0_3 = arith.constant 0 : index
    %c0_4 = arith.constant 0 : index
    %c0_5 = arith.constant 0 : index
    %13 = vector.load %arg8[%c0_3, %c0_4, %c0_5] : memref<2x8x32xf32, #tpu.memory_space<vmem>>, vector<2x8x32xf32>
    %14 = vector.shape_cast %13 : vector<2x8x32xf32> to vector<16x32xf32>
    %cst = arith.constant dense<0.000000e+00> : vector<16xf32>
    %15 = vector.multi_reduction <add>, %14, %cst [1] : vector<16x32xf32> to vector<16xf32>
    %16 = vector.shape_cast %15 : vector<16xf32> to vector<16x1xf32>
    %cst_6 = arith.constant 3.200000e+01 : f32
    %17 = vector.broadcast %cst_6 : f32 to vector<16x1xf32>
    %18 = arith.divf %16, %17 : vector<16x1xf32>
    %19 = vector.broadcast %18 : vector<16x1xf32> to vector<16x32xf32>
    %20 = arith.subf %14, %19 : vector<16x32xf32>
    %21 = arith.mulf %20, %20 : vector<16x32xf32>
    %cst_7 = arith.constant dense<0.000000e+00> : vector<16xf32>
    %22 = vector.multi_reduction <add>, %21, %cst_7 [1] : vector<16x32xf32> to vector<16xf32>
    %23 = vector.shape_cast %22 : vector<16xf32> to vector<16x1xf32>
    %cst_8 = arith.constant 3.200000e+01 : f32
    %24 = vector.broadcast %cst_8 : f32 to vector<16x1xf32>
    %25 = arith.divf %23, %24 : vector<16x1xf32>
    %26 = vector.broadcast %18 : vector<16x1xf32> to vector<16x32xf32>
    %27 = arith.subf %14, %26 : vector<16x32xf32>
    %cst_9 = arith.constant 9.99999974E-6 : f32
    %28 = vector.broadcast %cst_9 : f32 to vector<16x1xf32>
    %29 = arith.addf %25, %28 : vector<16x1xf32>
    %30 = math.rsqrt %29 : vector<16x1xf32>
    %31 = vector.broadcast %30 : vector<16x1xf32> to vector<16x32xf32>
    %32 = arith.mulf %27, %31 : vector<16x32xf32>
    %33 = vector.shape_cast %5 : vector<32xf32> to vector<1x32xf32>
    %34 = vector.broadcast %33 : vector<1x32xf32> to vector<16x32xf32>
    %35 = arith.mulf %32, %34 : vector<16x32xf32>
    %36 = vector.shape_cast %6 : vector<32xf32> to vector<1x32xf32>
    %37 = vector.broadcast %36 : vector<1x32xf32> to vector<16x32xf32>
    %38 = arith.addf %35, %37 : vector<16x32xf32>
    %39 = arith.truncf %38 : vector<16x32xf32> to vector<16x32xbf16>
    %c0_10 = arith.constant 0 : index
    %c0_11 = arith.constant 0 : index
    %c0_12 = arith.constant 0 : index
    %40 = vector.load %arg3[%c0_10, %c0_11, %c0_12] : memref<1x32x96xbf16, #tpu.memory_space<vmem>>, vector<1x32x96xbf16>
    %41 = vector.shape_cast %40 : vector<1x32x96xbf16> to vector<32x96xbf16>
    %cst_13 = arith.constant dense<0.000000e+00> : vector<16x96xf32>
    %42 = tpu.matmul %39, %41, %cst_13 {dimension_numbers = #tpu.dot_dimension_numbers<[1], [0], [0], [1], [0, 0, 1, 1], [], []>} : vector<16x32xbf16>, vector<32x96xbf16>, vector<16x96xf32> -> vector<16x96xf32>
    %43 = vector.shape_cast %7 : vector<96xf32> to vector<1x96xf32>
    %44 = vector.broadcast %43 : vector<1x96xf32> to vector<16x96xf32>
    %45 = arith.addf %42, %44 : vector<16x96xf32>
    %46 = vector.extract_strided_slice %45 {offsets = [0, 0], sizes = [16, 32], strides = [1, 1]} : vector<16x96xf32> to vector<16x32xf32>
    %47 = vector.shape_cast %46 : vector<16x32xf32> to vector<2x8x4x8xf32>
    %48 = tpu.transpose %47, [0, 2, 1, 3] : vector<2x8x4x8xf32> -> vector<2x4x8x8xf32>
    %49 = vector.shape_cast %48 : vector<2x4x8x8xf32> to vector<8x8x8xf32>
    %50 = arith.truncf %49 : vector<8x8x8xf32> to vector<8x8x8xbf16>
    %51 = vector.extract_strided_slice %45 {offsets = [0, 32], sizes = [16, 32], strides = [1, 1]} : vector<16x96xf32> to vector<16x32xf32>
    %52 = vector.shape_cast %51 : vector<16x32xf32> to vector<2x8x4x8xf32>
    %53 = tpu.transpose %52, [0, 2, 1, 3] : vector<2x8x4x8xf32> -> vector<2x4x8x8xf32>
    %54 = vector.shape_cast %53 : vector<2x4x8x8xf32> to vector<8x8x8xf32>
    %55 = arith.truncf %54 : vector<8x8x8xf32> to vector<8x8x8xbf16>
    %56 = vector.extract_strided_slice %45 {offsets = [0, 64], sizes = [16, 32], strides = [1, 1]} : vector<16x96xf32> to vector<16x32xf32>
    %57 = vector.shape_cast %56 : vector<16x32xf32> to vector<2x8x4x8xf32>
    %58 = tpu.transpose %57, [0, 2, 1, 3] : vector<2x8x4x8xf32> -> vector<2x4x8x8xf32>
    %59 = vector.shape_cast %58 : vector<2x4x8x8xf32> to vector<8x8x8xf32>
    %60 = arith.truncf %59 : vector<8x8x8xf32> to vector<8x8x8xbf16>
    "tpu.trace_start"() <{level = 10 : i32, message = "bqd,bkd->bqk"}> : () -> ()
    %cst_14 = arith.constant dense<0.000000e+00> : vector<8x8x8xf32>
    %61 = tpu.matmul %50, %55, %cst_14 {dimension_numbers = #tpu.dot_dimension_numbers<[2], [2], [1], [1], [0, 0, 0, 1, 1, 1], [0], [0]>} : vector<8x8x8xbf16>, vector<8x8x8xbf16>, vector<8x8x8xf32> -> vector<8x8x8xf32>
    "tpu.trace_stop"() : () -> ()
    %cst_15 = arith.constant dense<0xFF800000> : vector<8x8xf32>
    %62 = vector.multi_reduction <maximumf>, %61, %cst_15 [2] : vector<8x8x8xf32> to vector<8x8xf32>
    %63 = vector.shape_cast %62 : vector<8x8xf32> to vector<8x8x1xf32>
    %64 = vector.broadcast %63 : vector<8x8x1xf32> to vector<8x8x8xf32>
    %65 = arith.subf %61, %64 : vector<8x8x8xf32>
    %66 = math.exp %65 : vector<8x8x8xf32>
    %cst_16 = arith.constant dense<0.000000e+00> : vector<8x8xf32>
    %67 = vector.multi_reduction <add>, %66, %cst_16 [2] : vector<8x8x8xf32> to vector<8x8xf32>
    %68 = vector.shape_cast %67 : vector<8x8xf32> to vector<8x8x1xf32>
    %69 = tpu.reciprocal %68 {approx = true} : vector<8x8x1xf32> -> vector<8x8x1xf32>
    %70 = vector.broadcast %69 : vector<8x8x1xf32> to vector<8x8x8xf32>
    %71 = arith.mulf %66, %70 : vector<8x8x8xf32>
    %72 = arith.truncf %71 : vector<8x8x8xf32> to vector<8x8x8xbf16>
    "tpu.trace_start"() <{level = 10 : i32, message = "bqk,bkd->bqd"}> : () -> ()
    %cst_17 = arith.constant dense<0.000000e+00> : vector<8x8x8xf32>
    %73 = tpu.matmul %72, %60, %cst_17 {dimension_numbers = #tpu.dot_dimension_numbers<[2], [1], [1], [2], [0, 0, 0, 1, 1, 2], [0], [0]>} : vector<8x8x8xbf16>, vector<8x8x8xbf16>, vector<8x8x8xf32> -> vector<8x8x8xf32>
    "tpu.trace_stop"() : () -> ()
    %74 = vector.shape_cast %73 : vector<8x8x8xf32> to vector<2x4x8x8xf32>
    %75 = tpu.transpose %74, [0, 2, 1, 3] : vector<2x4x8x8xf32> -> vector<2x8x4x8xf32>
    %76 = vector.shape_cast %75 : vector<2x8x4x8xf32> to vector<16x32xf32>
    %77 = arith.truncf %76 : vector<16x32xf32> to vector<16x32xbf16>
    %c0_18 = arith.constant 0 : index
    %c0_19 = arith.constant 0 : index
    %c0_20 = arith.constant 0 : index
    %78 = vector.load %arg4[%c0_18, %c0_19, %c0_20] : memref<1x32x32xbf16, #tpu.memory_space<vmem>>, vector<1x32x32xbf16>
    %79 = vector.shape_cast %78 : vector<1x32x32xbf16> to vector<32x32xbf16>
    %cst_21 = arith.constant dense<0.000000e+00> : vector<16x32xf32>
    %80 = tpu.matmul %77, %79, %cst_21 {dimension_numbers = #tpu.dot_dimension_numbers<[1], [0], [0], [1], [0, 0, 1, 1], [], []>} : vector<16x32xbf16>, vector<32x32xbf16>, vector<16x32xf32> -> vector<16x32xf32>
    %81 = vector.shape_cast %8 : vector<32xf32> to vector<1x32xf32>
    %82 = vector.broadcast %81 : vector<1x32xf32> to vector<16x32xf32>
    %83 = arith.addf %80, %82 : vector<16x32xf32>
    %84 = arith.addf %14, %83 : vector<16x32xf32>
    %cst_22 = arith.constant dense<0.000000e+00> : vector<16xf32>
    %85 = vector.multi_reduction <add>, %84, %cst_22 [1] : vector<16x32xf32> to vector<16xf32>
    %86 = vector.shape_cast %85 : vector<16xf32> to vector<16x1xf32>
    %cst_23 = arith.constant 3.200000e+01 : f32
    %87 = vector.broadcast %cst_23 : f32 to vector<16x1xf32>
    %88 = arith.divf %86, %87 : vector<16x1xf32>
    %89 = vector.broadcast %88 : vector<16x1xf32> to vector<16x32xf32>
    %90 = arith.subf %84, %89 : vector<16x32xf32>
    %91 = arith.mulf %90, %90 : vector<16x32xf32>
    %cst_24 = arith.constant dense<0.000000e+00> : vector<16xf32>
    %92 = vector.multi_reduction <add>, %91, %cst_24 [1] : vector<16x32xf32> to vector<16xf32>
    %93 = vector.shape_cast %92 : vector<16xf32> to vector<16x1xf32>
    %cst_25 = arith.constant 3.200000e+01 : f32
    %94 = vector.broadcast %cst_25 : f32 to vector<16x1xf32>
    %95 = arith.divf %93, %94 : vector<16x1xf32>
    %96 = vector.broadcast %88 : vector<16x1xf32> to vector<16x32xf32>
    %97 = arith.subf %84, %96 : vector<16x32xf32>
    %cst_26 = arith.constant 9.99999974E-6 : f32
    %98 = vector.broadcast %cst_26 : f32 to vector<16x1xf32>
    %99 = arith.addf %95, %98 : vector<16x1xf32>
    %100 = math.rsqrt %99 : vector<16x1xf32>
    %101 = vector.broadcast %100 : vector<16x1xf32> to vector<16x32xf32>
    %102 = arith.mulf %97, %101 : vector<16x32xf32>
    %103 = vector.shape_cast %9 : vector<32xf32> to vector<1x32xf32>
    %104 = vector.broadcast %103 : vector<1x32xf32> to vector<16x32xf32>
    %105 = arith.mulf %102, %104 : vector<16x32xf32>
    %106 = vector.shape_cast %10 : vector<32xf32> to vector<1x32xf32>
    %107 = vector.broadcast %106 : vector<1x32xf32> to vector<16x32xf32>
    %108 = arith.addf %105, %107 : vector<16x32xf32>
    %109 = arith.truncf %108 : vector<16x32xf32> to vector<16x32xbf16>
    %c0_27 = arith.constant 0 : index
    %c0_28 = arith.constant 0 : index
    %c0_29 = arith.constant 0 : index
    %110 = vector.load %arg5[%c0_27, %c0_28, %c0_29] : memref<1x32x128xbf16, #tpu.memory_space<vmem>>, vector<1x32x128xbf16>
    %111 = vector.shape_cast %110 : vector<1x32x128xbf16> to vector<32x128xbf16>
    %cst_30 = arith.constant dense<0.000000e+00> : vector<16x128xf32>
    %112 = tpu.matmul %109, %111, %cst_30 {dimension_numbers = #tpu.dot_dimension_numbers<[1], [0], [0], [1], [0, 0, 1, 1], [], []>} : vector<16x32xbf16>, vector<32x128xbf16>, vector<16x128xf32> -> vector<16x128xf32>
    %113 = vector.shape_cast %11 : vector<128xf32> to vector<1x128xf32>
    %114 = vector.broadcast %113 : vector<1x128xf32> to vector<16x128xf32>
    %115 = arith.addf %112, %114 : vector<16x128xf32>
    %116 = arith.truncf %115 : vector<16x128xf32> to vector<16x128xbf16>
    %cst_31 = arith.constant 1.703130e+00 : bf16
    %117 = vector.broadcast %cst_31 : bf16 to vector<16x128xbf16>
    %118 = arith.mulf %117, %116 : vector<16x128xbf16>
    %119 = arith.negf %118 : vector<16x128xbf16>
    %120 = math.exp %119 : vector<16x128xbf16>
    %cst_32 = arith.constant 1.000000e+00 : bf16
    %121 = vector.broadcast %cst_32 : bf16 to vector<16x128xbf16>
    %122 = arith.addf %121, %120 : vector<16x128xbf16>
    %123 = arith.divf %121, %122 : vector<16x128xbf16>
    %124 = arith.mulf %116, %123 : vector<16x128xbf16>
    %c0_33 = arith.constant 0 : index
    %c0_34 = arith.constant 0 : index
    %c0_35 = arith.constant 0 : index
    %125 = vector.load %arg6[%c0_33, %c0_34, %c0_35] : memref<1x128x32xbf16, #tpu.memory_space<vmem>>, vector<1x128x32xbf16>
    %126 = vector.shape_cast %125 : vector<1x128x32xbf16> to vector<128x32xbf16>
    %cst_36 = arith.constant dense<0.000000e+00> : vector<16x32xf32>
    %127 = tpu.matmul %124, %126, %cst_36 {dimension_numbers = #tpu.dot_dimension_numbers<[1], [0], [0], [1], [0, 0, 1, 1], [], []>} : vector<16x128xbf16>, vector<128x32xbf16>, vector<16x32xf32> -> vector<16x32xf32>
    %128 = arith.addf %84, %127 : vector<16x32xf32>
    %129 = vector.shape_cast %12 : vector<32xf32> to vector<1x32xf32>
    %130 = vector.broadcast %129 : vector<1x32xf32> to vector<16x32xf32>
    %131 = arith.addf %128, %130 : vector<16x32xf32>
    %132 = vector.shape_cast %131 : vector<16x32xf32> to vector<2x8x32xf32>
    %c0_37 = arith.constant 0 : index
    %c0_38 = arith.constant 0 : index
    %c0_39 = arith.constant 0 : index
    %133 = vector.load %arg8[%c0_37, %c0_38, %c0_39] : memref<2x8x32xf32, #tpu.memory_space<vmem>>, vector<2x8x32xf32>
    tpu.vector_store %arg8[%c0_37, %c0_38, %c0_39], %132 {strides = array<i32>} : memref<2x8x32xf32, #tpu.memory_space<vmem>>, vector<2x8x32xf32>,
    return
  }
  func.func @transform_0(%arg0: i32, %arg1: i32) -> (i32, i32, i32) {
    %c0_i32 = arith.constant 0 : i32
    %c0_i32_0 = arith.constant 0 : i32
    %c0_i32_1 = arith.constant 0 : i32
    return %arg0, %c0_i32, %c0_i32_0 : i32, i32, i32
  }
  func.func @transform_1(%arg0: i32, %arg1: i32) -> (i32, i32, i32) {
    %c0_i32 = arith.constant 0 : i32
    %c0_i32_0 = arith.constant 0 : i32
    %c0_i32_1 = arith.constant 0 : i32
    return %arg1, %c0_i32, %c0_i32_0 : i32, i32, i32
  }
  func.func @transform_2(%arg0: i32, %arg1: i32) -> (i32, i32, i32) {
    %c0_i32 = arith.constant 0 : i32
    %c0_i32_0 = arith.constant 0 : i32
    %c0_i32_1 = arith.constant 0 : i32
    return %arg1, %c0_i32, %c0_i32_0 : i32, i32, i32
  }
  func.func @transform_3(%arg0: i32, %arg1: i32) -> (i32, i32, i32) {
    %c0_i32 = arith.constant 0 : i32
    %c0_i32_0 = arith.constant 0 : i32
    %c0_i32_1 = arith.constant 0 : i32
    return %arg1, %c0_i32, %c0_i32_0 : i32, i32, i32
  }
  func.func @transform_4(%arg0: i32, %arg1: i32) -> (i32, i32, i32) {
    %c0_i32 = arith.constant 0 : i32
    %c0_i32_0 = arith.constant 0 : i32
    %c0_i32_1 = arith.constant 0 : i32
    return %arg1, %c0_i32, %c0_i32_0 : i32, i32, i32
  }
  func.func @transform_5(%arg0: i32, %arg1: i32) -> (i32, i32, i32) {
    %c0_i32 = arith.constant 0 : i32
    %c0_i32_0 = arith.constant 0 : i32
    %c0_i32_1 = arith.constant 0 : i32
    return %arg1, %c0_i32, %c0_i32_0 : i32, i32, i32
  }
  func.func @transform_6(%arg0: i32, %arg1: i32) -> (i32, i32, i32) {
    %c0_i32 = arith.constant 0 : i32
    %c0_i32_0 = arith.constant 0 : i32
    %c0_i32_1 = arith.constant 0 : i32
    return %arg0, %c0_i32, %c0_i32_0 : i32, i32, i32
  }
}

</mosaic_0001>

<bundles_post_ra>
// kernel: tpu_custom_call.1
= control target key start
LH: loop header
LB: loop body
LE: loop exit
PB: predicated region body
PF: predicated region fallthrough
CT: control target
= control target key end

     0   :  { %11 = vsyncpa [#allocation3], 0  ;;  %s3451_s21 = smov 0   ;;  %s3453_s22 = smov 0   ;;  %s4020_s0 = inlined_call_operand.vmem [shape: f32[2,8,32], index: 0, kind: input, shape index: {}]   ;;  %s4021_s1 = inlined_call_operand.vmem [shape: bf16[2,32,96], index: 1, kind: input, shape index: {}]   ;;  %s4022_s2 = inlined_call_operand.vmem [shape: bf16[2,32,32], index: 2, kind: input, shape index: {}]   ;;  %s4023_s3 = inlined_call_operand.vmem [shape: bf16[2,32,128], index: 3, kind: input, shape index: {}]   ;;  %s4024_s4 = inlined_call_operand.vmem [shape: bf16[2,128,32], index: 4, kind: input, shape index: {}]   ;;  %s4025_s5 = inlined_call_operand.vmem [shape: f32[2,1,416], index: 5, kind: input, shape index: {}]   ;;  %s4026_s6 = inlined_call_operand.hbm [shape: f32[2,8,32], index: 6, kind: output, shape index: {}]  }
   0x1   :  { %s3455_s23 = smov 0  }
   0x2 LB: > { %s2965_s24 = sadd.s32 4294967295, %s3399_s23   ;;  %s26_s25 = sadd.s32 1, %s3395_s22  ;;  %s3399_s23 = sphi %s3455_s23, %s17_s23   ;;  %s3395_s22 = sphi %s3453_s22, %s4029_s22   ;;  %s3391_s21 = sphi %s3451_s21, %s4028_s21  }
   0x3   : > { %p27_p0 = scmp.ge.s32.totalorder %s26_s25, 2  ;;  %p2969_p1 = scmp.ge.s32.totalorder %s3399_s23, 1 }
   0x4   : > { %p275_p2 = scmp.lt.s32.totalorder %s3399_s23, 3 }
   0x5   : > { %s4031_s25 = smov (%p27_p0, %s26_s25), 0 }
   0x6   : > { %p276_p3 = pnand %p2969_p1, %p275_p2 }
   0x7   : > { %p330_p4 = scmp.lt.s32.totalorder (!%p276_p3), %s3391_s21, 1  ;;  %p2979_p5 = scmp.ne.s32.totalorder (!%p276_p3), %s3391_s21, 0 }
   0x8   : > { %279 = sbr.rel (%p276_p3) target bundleno = 2684 (0xa7c), region = 44 }
   0xd   : > { %s331_s26 = scalar_select %p330_p4, %s3391_s21, 1 }
   0xf   : > { %s3034_s27 = sshll.u32 %s331_s26, 4  ;;  %s3037_s28 = sshll.u32 %s331_s26, 6 }
  0x10   : > { %s3473_s7 = scalar_lea.vmem %s4021_s1, %s3034_s27  ;;  %s3478_s10 = scalar_lea.vmem %s4022_s2, %s3034_s27 }
  0x11   : > { %s3483_s13 = scalar_lea.vmem %s4023_s3, %s3034_s27  ;;  %s3488_s16 = scalar_lea.vmem %s4024_s4, %s3037_s28 }
  0x12   : > { %s2978_s17 = sshll.u32 %s331_s26, 2  ;;  %361 = sbr.rel (%p2979_p5) target bundleno = 25 (0x19), region = 48 }
  0x13   : > { %s3493_s20 = scalar_lea.vmem %s4025_s5, %s2978_s17 }
  0x17   : > { %v362_v0 = vld [vmem:[%s4020_s0] sm:$0xff]  ;;  %vm364_vm0 = vcmask 261120   ;;  %v363_v1 = vld [vmem:[%s4020_s0 + $0x8] sm:$0xff] }
  0x18   : > { %365 = vst.msk [vmem:[#allocation2] sm:$0xff] %vm364_vm0, %v362_v0  ;;  %366 = vst.msk [vmem:[#allocation2 + $0x8] sm:$0xff] %vm364_vm0, %v363_v1 }
  0x19 PF: > { %vm370_vm1 = vcmask 261120   ;;  %v399_v6 = vlaneseq  ;;  %v367_v8 = vld [vmem:[%s3493_s20] sm:$0xf]  ;;  %s3401_s21 = smov 96   ;;  %v3288_v21 = vld [vmem:[%s3473_s7 + $0x8] sm:$0xff]   ;;  %v3402_v22 = vmov 0.0  }
  0x1a   : > { %3088 = vmatprep.subr.bf16.mxu0 %v3402_v22  ;;  %3108 = vmatprep.subr.bf16.mxu1 %v3402_v22  ;;  %v3289_v23 = vld [vmem:[%s3473_s7] sm:$0xff]   ;;  %vm3403_vm2 = vmmov 0   ;;  %s3404_s26 = smov 64   ;;  %vm436_vm3 = vcmask 523264   ;;  %s3405_s28 = smov 112   ;;  %vm1391_vm4 = vcmask 64512  }
  0x1b   : > { %v3503_v7 = vshrl.u32 %v399_v6, 7  ;;  %3089 = vmatpush3.bf16.msra.mxu0 %v3288_v21  ;;  %3092 = vmatprep.mubr.msk.bf16.mxu0 %vm3403_vm2, %v3402_v22  ;;  %s3406_s7 = smov 120   ;;  %s3407_s9 = smov 104   ;;  %v3408_v57 = vmov 1983009808   ;;  %vm1859_vm5 = vcmask 1043456  }
  0x1c   : > { %3090 = vmatprep.subr.bf16.mxu0 %v3402_v22  ;;  %3110 = vmatprep.mubr.msk.bf16.mxu1 %vm3403_vm2, %v3402_v22  ;;  %v506_v58 = vunpack.c.l.s4 %v3408_v57  ;;  %v3409_v60 = vmov 1934713408   ;;  %s3410_s11 = smov 16   ;;  %s3412_s12 = smov 24   ;;  %vm2523_vm6 = vcmask 130048   ;;  %vm2526_vm7 = vcmask 195584  }
  0x1d   : > { %v3507_v9 = vsub.s32 0, %v3503_v7  ;;  %v418_v24 = vsub.s32 1, %v3503_v7  ;;  %v538_v61 = vunpack.c.l.s4 %v3409_v60  ;;  %s3413_s14 = smov 32   ;;  %p3994_p6 = scmp.eq.s32.totalorder %s2965_s24, 1 }
  0x1e   : > { %v507_v59 = vunpack.c.0.s8 %v506_v58 }
  0x1f   : > { %v368_v2 = vld [vmem:[#allocation2] sm:$0xff]  ;;  %v369_v3 = vld [vmem:[#allocation2 + $0x8] sm:$0xff]  ;;  %v402_v10 = vrot.slane %v367_v8, %v3507_v9  ;;  %3091 = vmatpush3.bf16.msra.mxu0 %v3289_v23  ;;  %v419_v25 = vrot.slane %v367_v8, %v418_v24 }
  0x20   : > { %v371_v4 = vsel %vm370_vm1, %v368_v2, 0.0  ;;  %v374_v5 = vsel %vm370_vm1, %v369_v3, 0.0  ;;  %3096 = vmatprep.subr.bf16.mxu0 %v3402_v22  ;;  %v3565_v63 = vsub.s32 %v507_v59, %v3503_v7 }
  0x21   : > { %372 = vadd.xlane.f32.xlu0 %v371_v4 }
  0x25   : > { %375 = vadd.xlane.f32.xlu0 %v374_v5 }
  0x3b   : > { %406 = vrot.lane.b32.xlu0 %v402_v10, %s3401_s21 }
  0xaa   : > { %v373_v11 = vpop.xlane.xlu0 %372 }
  0xab   : > { %v378_v12 = vmul.f32 0.03125, %v373_v11 }
  0xad   : > { %v380_v13 = vsub.f32 %v368_v2, %v378_v12  ;;  %v539_v2 = vunpack.c.0.s8 %v538_v61 }
  0xae   : > { %v376_v14 = vpop.xlane.xlu0 %375 }
  0xaf   : > { %v379_v15 = vmul.f32 0.03125, %v376_v14  ;;  %v382_v16 = vmul.f32 %v380_v13, %v380_v13  ;;  %v3575_v8 = vsub.s32 %v539_v2, %v3503_v7 }
  0xb1   : > { %v381_v17 = vsub.f32 %v369_v3, %v379_v15  ;;  %v384_v18 = vsel %vm370_vm1, %v382_v16, 0.0 }
  0xb2   : > { %385 = vadd.xlane.f32.xlu1 %v384_v18  ;;  %v407_v37 = vpop.permute.xlu0 %406 }
  0xb3   : > { %v383_v19 = vmul.f32 %v381_v17, %v381_v17 }
  0xb5   : > { %v387_v20 = vsel %vm370_vm1, %v383_v19, 0.0 }
  0xb6   : > { %388 = vadd.xlane.f32.xlu1 %v387_v20 }
  0xc7   : > { %432 = vrot.lane.b32.xlu1 %v402_v10, %s3404_s26 }
  0xcb   : > { %434 = vrot.lane.b32.xlu1 %v419_v25, %s3404_s26 }
 0x13b   : > { %v386_v26 = vpop.xlane.xlu1 %385 }
 0x13c   : > { %v390_v27 = vmul.f32 0.03125, %v386_v26 }
 0x13e   : > { %v392_v28 = vadd.f32 1e-05, %v390_v27 }
 0x13f   : > { %v389_v29 = vpop.xlane.xlu1 %388 }
 0x140   : > { %3302 = vrsqrt.f32 %v392_v28  ;;  %v391_v30 = vmul.f32 0.03125, %v389_v29 }
 0x142   : > { %v393_v31 = vadd.f32 1e-05, %v391_v30 }
 0x143   : > { %v433_v42 = vpop.permute.xlu1 %432 }
 0x144   : > { %3304 = vrsqrt.f32 %v393_v31 }
 0x147   : > { %v435_v43 = vpop.permute.xlu1 %434 }
 0x148   : > { %v437_v44 = vsel %vm436_vm3, %v433_v42, %v435_v43 }
 0x14d   : > { %v3303_v32 = vpop.eup %3302 }
 0x14e   : > { %v396_v33 = vmul.f32 %v3303_v32, %v380_v13 }
 0x150   : > { %v404_v36 = vmul.f32 %v402_v10, %v396_v33 }
 0x151   : > { %v3305_v34 = vpop.eup %3304 }
 0x152   : > { %v397_v35 = vmul.f32 %v3305_v34, %v381_v17  ;;  %v409_v39 = vadd.f32 %v407_v37, %v404_v36 }
 0x154   : > { %v405_v38 = vmul.f32 %v402_v10, %v397_v35 }
 0x156   : > { %v410_v40 = vadd.f32 %v407_v37, %v405_v38 }
 0x158   : > { %v411_v41 = vpack.c.bf16 %v410_v40, %v409_v39 }
 0x15a   : > { %3093 = vmatmul.mubr.msk.bf16.vlgmr.msra.gmra.mxu0 %vm370_vm1, %v411_v41 }
 0x15b   : > { %3098 = vmatprep.mubr.msk.bf16.mxu0 %vm3403_vm2, %v3402_v22 }
 0x21a   : > { %v476_v45 = vpop.f32.mrf.mxu0 }
 0x21b   : > { %v477_v46 = vadd.f32 %v476_v45, %v437_v44 }
 0x21c   : > { %v3094_v47 = vpop.f32.mrf.mxu0 }
 0x21d   : > { %491 = vrot.lane.b32.xlu0 %v477_v46, %s3405_s28  ;;  %485 = vrot.lane.b32.xlu1 %v477_v46, %s3406_s7 }
 0x21e   : > { %v479_v48 = vpop.f32.mrf.mxu0 }
 0x21f   : > { %v3529_v49 = vadd.f32 %v479_v48, %v437_v44 }
 0x220   : > { %v3095_v50 = vpop.f32.mrf.mxu0 }
 0x221   : > { %497 = vrot.lane.b32.xlu1 %v477_v46, %s3407_s9  ;;  %487 = vrot.lane.b32.xlu0 %v3529_v49, %s3406_s7 }
 0x225   : > { %493 = vrot.lane.b32.xlu1 %v3529_v49, %s3405_s28  ;;  %499 = vrot.lane.b32.xlu0 %v3529_v49, %s3407_s9 }
 0x229   : > { %783 = vrot.lane.b32.xlu1 %v477_v46, %s3401_s21 }
 0x28f   : > { %v3535_v51 = vpop.permute.xlu0 %491  ;;  %v3537_v52 = vpop.permute.xlu1 %485 }
 0x290   : > { %791 = vrot.lane.b32.xlu1 %v3535_v51, %s3401_s21  ;;  %787 = vrot.lane.b32.xlu0 %v3537_v52, %s3401_s21  ;;  %v503_v0 = vcombine.low %v477_v46, %v3535_v51  ;;  %v504_v3 = vcombine.high %v477_v46, %v3535_v51 }
 0x292   : > { %v511_v5 = vrot.slane %v503_v0, %v3565_v63  ;;  %v518_v10 = vrot.slane %v504_v3, %v3565_v63 }
 0x293   : > { %v3543_v53 = vpop.permute.xlu1 %497  ;;  %v3549_v54 = vpop.permute.xlu0 %487 }
 0x294   : > { %785 = vrot.lane.b32.xlu1 %v3529_v49, %s3401_s21  ;;  %795 = vrot.lane.b32.xlu0 %v3543_v53, %s3401_s21  ;;  %v519_v62 = vcombine.low %v3537_v52, %v3543_v53  ;;  %v520_v1 = vcombine.high %v3537_v52, %v3543_v53 }
 0x296   : > { %v527_v4 = vrot.slane %v519_v62, %v3565_v63  ;;  %v534_v6 = vrot.slane %v520_v1, %v3565_v63 }
 0x297   : > { %v3551_v55 = vpop.permute.xlu1 %493  ;;  %v3557_v56 = vpop.permute.xlu0 %499 }
 0x298   : > { %793 = vrot.lane.b32.xlu1 %v3551_v55, %s3401_s21  ;;  %789 = vrot.lane.b32.xlu0 %v3549_v54, %s3401_s21  ;;  %v535_v11 = vcombine.low %v511_v5, %v527_v4  ;;  %v536_v12 = vcombine.high %v511_v5, %v527_v4  ;;  %v551_v13 = vcombine.low %v518_v10, %v534_v6 }
 0x299   : > { %v552_v14 = vcombine.high %v518_v10, %v534_v6  ;;  %v571_v15 = vcombine.low %v3529_v49, %v3551_v55  ;;  %v587_v16 = vcombine.low %v3549_v54, %v3557_v56  ;;  %v572_v7 = vcombine.high %v3529_v49, %v3551_v55 }
 0x29a   : > { %v543_v17 = vrot.slane %v535_v11, %v3575_v8  ;;  %v550_v18 = vrot.slane %v536_v12, %v3575_v8  ;;  %v588_v19 = vcombine.high %v3549_v54, %v3557_v56  ;;  %v559_v20 = vrot.slane %v551_v13, %v3575_v8 }
 0x29b   : > { %v566_v21 = vrot.slane %v552_v14, %v3575_v8  ;;  %v579_v23 = vrot.slane %v571_v15, %v3565_v63  ;;  %v595_v24 = vrot.slane %v587_v16, %v3565_v63  ;;  %v784_v25 = vpop.permute.xlu1 %783  ;;  %v586_v28 = vrot.slane %v572_v7, %v3565_v63 }
 0x29c   : > { %1087 = vrot.lane.b32.xlu1 %v477_v46, %s3404_s26  ;;  %797 = vrot.lane.b32.xlu0 %v3557_v56, %s3401_s21  ;;  %v639_v26 = vcombine.low %v543_v17, %v550_v18  ;;  %v2983_v27 = vcombine.high %v543_v17, %v550_v18  ;;  %v602_v29 = vrot.slane %v588_v19, %v3565_v63 }
 0x29d   : > { %v655_v30 = vcombine.low %v559_v20, %v566_v21  ;;  %v2984_v31 = vcombine.high %v559_v20, %v566_v21  ;;  %v603_v32 = vcombine.low %v579_v23, %v595_v24  ;;  %v604_v33 = vcombine.high %v579_v23, %v595_v24 }
 0x29e   : > { %v646_v36 = vrot.slane %v639_v26, %v3565_v63  ;;  %v654_v37 = vrot.slane %v2983_v27, %v3565_v63  ;;  %v619_v38 = vcombine.low %v586_v28, %v602_v29  ;;  %v620_v39 = vcombine.high %v586_v28, %v602_v29 }
 0x29f   : > { %v3597_v42 = vrot.slane %v655_v30, %v3565_v63  ;;  %v3600_v43 = vrot.slane %v2984_v31, %v3565_v63  ;;  %v3603_v44 = vrot.slane %v603_v32, %v3575_v8  ;;  %v3606_v45 = vrot.slane %v604_v33, %v3575_v8 }
 0x2a0   : > { %v3609_v57 = vrot.slane %v619_v38, %v3575_v8  ;;  %v3612_v58 = vrot.slane %v620_v39, %v3575_v8  ;;  %v671_v59 = vcombine.low %v646_v36, %v654_v37  ;;  %v672_v3 = vcombine.high %v646_v36, %v654_v37 }
 0x2a1   : > { %v707_v1 = vcombine.low %v3603_v44, %v3606_v45  ;;  %v687_v2 = vcombine.low %v3597_v42, %v3600_v43  ;;  %v2985_v13 = vcombine.high %v3603_v44, %v3606_v45  ;;  %v688_v33 = vcombine.high %v3597_v42, %v3600_v43 }
 0x2a2   : > { %v723_v14 = vcombine.low %v3609_v57, %v3612_v58  ;;  %v2986_v15 = vcombine.high %v3609_v57, %v3612_v58  ;;  %v3629_v16 = vrot.slane %v671_v59, %v3575_v8  ;;  %v3639_v24 = vrot.slane %v672_v3, %v3575_v8 }
 0x2a3   : > { %v3636_v23 = vrot.slane %v687_v2, %v3575_v8  ;;  %v3642_v30 = vrot.slane %v707_v1, %v3565_v63  ;;  %v3663_v2 = vrot.slane %v2985_v13, %v3565_v63 }
 0x2a4   : > { %v3666_v3 = vrot.slane %v723_v14, %v3565_v63 }
 0x302   : > { %v792_v34 = vpop.permute.xlu1 %791  ;;  %v788_v35 = vpop.permute.xlu0 %787 }
 0x303   : > { %v807_v40 = vcombine.low %v784_v25, %v792_v34  ;;  %v808_v41 = vcombine.high %v784_v25, %v792_v34 }
 0x305   : > { %v815_v60 = vrot.slane %v807_v40, %v3565_v63  ;;  %v822_v61 = vrot.slane %v808_v41, %v3565_v63 }
 0x306   : > { %v786_v46 = vpop.permute.xlu1 %785  ;;  %v796_v47 = vpop.permute.xlu0 %795 }
 0x307   : > { %v823_v48 = vcombine.low %v788_v35, %v796_v47  ;;  %v824_v50 = vcombine.high %v788_v35, %v796_v47 }
 0x309   : > { %v831_v62 = vrot.slane %v823_v48, %v3565_v63  ;;  %v838_v0 = vrot.slane %v824_v50, %v3565_v63 }
 0x30a   : > { %v794_v11 = vpop.permute.xlu1 %793  ;;  %v790_v12 = vpop.permute.xlu0 %789 }
 0x30b   : > { %v839_v4 = vcombine.low %v815_v60, %v831_v62  ;;  %v840_v5 = vcombine.high %v815_v60, %v831_v62  ;;  %v855_v6 = vcombine.low %v822_v61, %v838_v0  ;;  %v856_v10 = vcombine.high %v822_v61, %v838_v0 }
 0x30c   : > { %v875_v20 = vcombine.low %v786_v46, %v794_v11  ;;  %v876_v21 = vcombine.high %v786_v46, %v794_v11 }
 0x30d   : > { %v847_v17 = vrot.slane %v839_v4, %v3575_v8  ;;  %v854_v18 = vrot.slane %v840_v5, %v3575_v8  ;;  %v863_v7 = vrot.slane %v855_v6, %v3575_v8  ;;  %v870_v19 = vrot.slane %v856_v10, %v3575_v8 }
 0x30e   : > { %v798_v29 = vpop.permute.xlu0 %797  ;;  %v883_v38 = vrot.slane %v875_v20, %v3565_v63  ;;  %v890_v39 = vrot.slane %v876_v21, %v3565_v63 }
 0x30f   : > { %v943_v25 = vcombine.low %v847_v17, %v854_v18  ;;  %v2987_v26 = vcombine.high %v847_v17, %v854_v18  ;;  %v959_v27 = vcombine.low %v863_v7, %v870_v19  ;;  %v2988_v28 = vcombine.high %v863_v7, %v870_v19 }
 0x310   : > { %v891_v31 = vcombine.low %v790_v12, %v798_v29  ;;  %v892_v32 = vcombine.high %v790_v12, %v798_v29  ;;  %v738_v17 = vrot.slane %v2986_v15, %v3565_v63  ;;  %v702_v19 = vrot.slane %v688_v33, %v3575_v8 }
 0x311   : > { %v950_v34 = vrot.slane %v943_v25, %v3565_v63  ;;  %v958_v35 = vrot.slane %v2987_v26, %v3565_v63  ;;  %v966_v36 = vrot.slane %v959_v27, %v3565_v63  ;;  %v974_v37 = vrot.slane %v2988_v28, %v3565_v63 }
 0x312   : > { %v899_v40 = vrot.slane %v891_v31, %v3565_v63  ;;  %v906_v41 = vrot.slane %v892_v32, %v3565_v63  ;;  %v703_v31 = vcombine.low %v3629_v16, %v3636_v23  ;;  %v705_v32 = vcombine.low %v3639_v24, %v702_v19 }
 0x313   : > { %v975_v44 = vcombine.low %v950_v34, %v958_v35  ;;  %v991_v45 = vcombine.low %v966_v36, %v974_v37  ;;  %v976_v46 = vcombine.high %v950_v34, %v958_v35  ;;  %v992_v42 = vcombine.high %v966_v36, %v974_v37 }
 0x314   : > { %v907_v43 = vcombine.low %v883_v38, %v899_v40  ;;  %v908_v47 = vcombine.high %v883_v38, %v899_v40  ;;  %v923_v48 = vcombine.low %v890_v39, %v906_v41  ;;  %v924_v50 = vcombine.high %v890_v39, %v906_v41 }
 0x315   : > { %v983_v57 = vrot.slane %v975_v44, %v3575_v8  ;;  %v999_v58 = vrot.slane %v991_v45, %v3575_v8  ;;  %v990_v59 = vrot.slane %v976_v46, %v3575_v8  ;;  %v1006_v60 = vrot.slane %v992_v42, %v3575_v8 }
 0x316   : > { %v915_v61 = vrot.slane %v907_v43, %v3575_v8  ;;  %v922_v62 = vrot.slane %v908_v47, %v3575_v8  ;;  %v931_v0 = vrot.slane %v923_v48, %v3575_v8  ;;  %v938_v1 = vrot.slane %v924_v50, %v3575_v8 }
 0x317   : > { %v1007_v4 = vcombine.low %v983_v57, %v999_v58  ;;  %v1009_v5 = vcombine.low %v990_v59, %v1006_v60  ;;  %v1008_v27 = vcombine.high %v983_v57, %v999_v58  ;;  %v739_v36 = vcombine.low %v3642_v30, %v3663_v2 }
 0x318   : > { %v1011_v6 = vcombine.low %v915_v61, %v922_v62  ;;  %v2989_v10 = vcombine.high %v915_v61, %v922_v62  ;;  %v1027_v11 = vcombine.low %v931_v0, %v938_v1  ;;  %v2990_v12 = vcombine.high %v931_v0, %v938_v1 }
 0x319   : > { %v1079_v18 = vpack.c.bf16 %v1007_v4, %v1007_v4  ;;  %v1081_v7 = vpack.c.bf16 %v1009_v5, %v1009_v5  ;;  %v755_v37 = vcombine.low %v3666_v3, %v738_v17  ;;  %v1080_v38 = vpack.c.bf16 %v1008_v27, %v1008_v27 }
 0x31a   : > { %v1018_v20 = vrot.slane %v1011_v6, %v3565_v63  ;;  %v1026_v13 = vrot.slane %v2989_v10, %v3565_v63  ;;  %v1034_v21 = vrot.slane %v1027_v11, %v3565_v63  ;;  %v1042_v14 = vrot.slane %v2990_v12, %v3565_v63 }
 0x31b   : > { %v1396_v25 = vsel %vm1391_vm4, %v1079_v18, 0  ;;  %v1488_v26 = vsel %vm1391_vm4, %v1081_v7, 0  ;;  %v775_v44 = vpack.c.bf16 %v703_v31, %v703_v31  ;;  %v777_v45 = vpack.c.bf16 %v705_v32, %v705_v32 }
 0x31c   : > { %3097 = vmatpush3.bf16.xpose.msra.mxu0 %v1396_v25  ;;  %3109 = vmatpush3.bf16.xpose.msra.mxu1 %v1488_v26  ;;  %v1043_v15 = vcombine.low %v1018_v20, %v1026_v13  ;;  %v1059_v28 = vcombine.low %v1034_v21, %v1042_v14  ;;  %v1044_v29 = vcombine.high %v1018_v20, %v1026_v13  ;;  %v1442_v47 = vsel %vm1391_vm4, %v1080_v38, 0 }
 0x31d   : > { %3102 = vmatprep.subr.bf16.mxu0 %v3402_v22  ;;  %3120 = vmatprep.subr.bf16.mxu1 %v3402_v22  ;;  %v1060_v33 = vcombine.high %v1034_v21, %v1042_v14  ;;  %v747_v42 = vrot.slane %v739_v36, %v3575_v8  ;;  %v763_v43 = vrot.slane %v755_v37, %v3575_v8 }
 0x31e   : > { %v1051_v34 = vrot.slane %v1043_v15, %v3575_v8  ;;  %v1067_v35 = vrot.slane %v1059_v28, %v3575_v8  ;;  %v1058_v40 = vrot.slane %v1044_v29, %v3575_v8  ;;  %v1010_v48 = vcombine.high %v990_v59, %v1006_v60 }
 0x31f   : > { %v1074_v41 = vrot.slane %v1060_v33, %v3575_v8  ;;  %v704_v58 = vcombine.high %v3629_v16, %v3636_v23  ;;  %v771_v61 = vcombine.low %v747_v42, %v763_v43  ;;  %v740_v59 = vcombine.high %v3642_v30, %v3663_v2 }
 0x320   : > { %v1075_v39 = vcombine.low %v1051_v34, %v1067_v35  ;;  %v756_v60 = vcombine.high %v3666_v3, %v738_v17  ;;  %v1082_v62 = vpack.c.bf16 %v1010_v48, %v1010_v48  ;;  %v1076_v23 = vcombine.high %v1051_v34, %v1067_v35 }
 0x321   : > { %v1077_v57 = vcombine.low %v1058_v40, %v1074_v41  ;;  %v776_v1 = vpack.c.bf16 %v704_v58, %v704_v58  ;;  %v779_v4 = vpack.c.bf16 %v771_v61, %v771_v61  ;;  %v754_v5 = vrot.slane %v740_v59, %v3575_v8 }
 0x322   : > { %v1083_v46 = vpack.c.bf16 %v1075_v39, %v1075_v39  ;;  %v770_v6 = vrot.slane %v756_v60, %v3575_v8  ;;  %v1534_v16 = vsel %vm1391_vm4, %v1082_v62, 0  ;;  %v706_v2 = vcombine.high %v3639_v24, %v702_v19 }
 0x323   : > { %3099 = vmatmul.mubr.msk.bf16.vlgmr.msra.gmra.mxu0 %vm1391_vm4, %v775_v44  ;;  %3111 = vmatmul.mubr.msk.bf16.vlgmr.msra.gmra.mxu1 %vm1391_vm4, %v777_v45  ;;  %v1085_v0 = vpack.c.bf16 %v1077_v57, %v1077_v57  ;;  %v1084_v10 = vpack.c.bf16 %v1076_v23, %v1076_v23  ;;  %v1078_v24 = vcombine.high %v1058_v40, %v1074_v41 }
 0x324   : > { %3103 = vmatpush3.bf16.xpose.msra.mxu0 %v1442_v47  ;;  %v1580_v50 = vsel %vm1391_vm4, %v1083_v46, 0  ;;  %3104 = vmatprep.mubr.msk.bf16.mxu0 %vm3403_vm2, %v3402_v22  ;;  %v773_v3 = vcombine.low %v754_v5, %v770_v6  ;;  %v778_v11 = vpack.c.bf16 %v706_v2, %v706_v2  ;;  %v772_v18 = vcombine.high %v747_v42, %v763_v43  ;;  %v1088_v2 = vpop.permute.xlu1 %1087 }
 0x325   : > { %3121 = vmatpush3.bf16.xpose.msra.mxu1 %v1580_v50  ;;  %3122 = vmatprep.mubr.msk.bf16.mxu1 %vm3403_vm2, %v3402_v22  ;;  %v1672_v30 = vsel %vm1391_vm4, %v1085_v0, 0  ;;  %v1626_v17 = vsel %vm1391_vm4, %v1084_v10, 0  ;;  %v1086_v7 = vpack.c.bf16 %v1078_v24, %v1078_v24  ;;  %v774_v13 = vcombine.high %v754_v5, %v770_v6 }
 0x326   : > { %3114 = vmatprep.subr.bf16.mxu0 %v3402_v22  ;;  %3132 = vmatprep.subr.bf16.mxu1 %v3402_v22  ;;  %v781_v12 = vpack.c.bf16 %v773_v3, %v773_v3  ;;  %v780_v19 = vpack.c.bf16 %v772_v18, %v772_v18 }
 0x327   : > { %v1718_v20 = vsel %vm1391_vm4, %v1086_v7, 0  ;;  %v782_v21 = vpack.c.bf16 %v774_v13, %v774_v13 }
 0x32b   : > { %3105 = vmatmul.mubr.msk.bf16.vlgmr.msra.gmra.mxu0 %vm1391_vm4, %v776_v1 }
 0x32c   : > { %3123 = vmatmul.mubr.msk.bf16.vlgmr.msra.gmra.mxu1 %vm1391_vm4, %v779_v4  ;;  %3115 = vmatpush3.bf16.xpose.msra.mxu0 %v1534_v16 }
 0x32d   : > { %3133 = vmatpush3.bf16.xpose.msra.mxu1 %v1672_v30  ;;  %3116 = vmatprep.mubr.msk.bf16.mxu0 %vm3403_vm2, %v3402_v22 }
 0x32e   : > { %3134 = vmatprep.mubr.msk.bf16.mxu1 %vm3403_vm2, %v3402_v22  ;;  %3126 = vmatprep.subr.bf16.mxu0 %v3402_v22 }
 0x32f   : > { %3144 = vmatprep.subr.bf16.mxu1 %v3402_v22 }
 0x333   : > { %3117 = vmatmul.mubr.msk.bf16.vlgmr.msra.gmra.mxu0 %vm1391_vm4, %v778_v11 }
 0x334   : > { %3135 = vmatmul.mubr.msk.bf16.vlgmr.msra.gmra.mxu1 %vm1391_vm4, %v781_v12  ;;  %3127 = vmatpush3.bf16.xpose.msra.mxu0 %v1626_v17 }
 0x335   : > { %3128 = vmatprep.mubr.msk.bf16.mxu0 %vm3403_vm2, %v3402_v22  ;;  %3138 = vmatprep.subr.bf16.mxu0 %v3402_v22 }
 0x336   : > { %3146 = vmatprep.mubr.msk.bf16.mxu1 %vm3403_vm2, %v3402_v22 }
 0x33b   : > { %3129 = vmatmul.mubr.msk.bf16.vlgmr.msra.gmra.mxu0 %vm1391_vm4, %v780_v19 }
 0x33c   : > { %3139 = vmatpush3.bf16.xpose.msra.mxu0 %v1718_v20  ;;  %3140 = vmatprep.mubr.msk.bf16.mxu0 %vm3403_vm2, %v3402_v22 }
 0x33d   : > { %3150 = vmatprep.subr.bf16.mxu0 %v3402_v22 }
 0x343   : > { %3141 = vmatmul.mubr.msk.bf16.vlgmr.msra.gmra.mxu0 %vm1391_vm4, %v782_v21 }
 0x344   : > { %3152 = vmatprep.mubr.msk.bf16.mxu0 %vm3403_vm2, %v3402_v22 }
 0x3e3   : > { %v1432_v14 = vpop.f32.mrf.mxu0  ;;  %v1524_v25 = vpop.f32.mrf.mxu1 }
 0x3e4   : > { %v1766_v26 = vsel %vm1391_vm4, %v1524_v25, -inf  ;;  %v1760_v27 = vsel %vm1391_vm4, %v1432_v14, -inf }
 0x3e5   : > { %1767 = vmax.xlane.f32.xlu0 %v1766_v26  ;;  %v3112_v15 = vpop.f32.mrf.mxu1  ;;  %1761 = vmax.xlane.f32.xlu1 %v1760_v27  ;;  %v3100_v28 = vpop.f32.mrf.mxu0 }
 0x3e7   : > { %v1435_v29 = vpop.f32.mrf.mxu0  ;;  %v1527_v31 = vpop.f32.mrf.mxu1 }
 0x3e9   : > { %v3101_v32 = vpop.f32.mrf.mxu0  ;;  %v3113_v33 = vpop.f32.mrf.mxu1 }
 0x3eb   : > { %v1478_v34 = vpop.f32.mrf.mxu0 }
 0x3ec   : > { %v1616_v35 = vpop.f32.mrf.mxu1  ;;  %v1763_v36 = vsel %vm1391_vm4, %v1478_v34, -inf }
 0x3ed   : > { %v1772_v37 = vsel %vm1391_vm4, %v1616_v35, -inf  ;;  %1764 = vmax.xlane.f32.xlu0 %v1763_v36  ;;  %v3106_v38 = vpop.f32.mrf.mxu0 }
 0x3ee   : > { %v3124_v39 = vpop.f32.mrf.mxu1  ;;  %1773 = vmax.xlane.f32.xlu1 %v1772_v37 }
 0x3ef   : > { %v1481_v40 = vpop.f32.mrf.mxu0 }
 0x3f0   : > { %v1619_v41 = vpop.f32.mrf.mxu1 }
 0x3f1   : > { %v3107_v44 = vpop.f32.mrf.mxu0 }
 0x3f2   : > { %v3125_v45 = vpop.f32.mrf.mxu1 }
 0x3f3   : > { %v1570_v46 = vpop.f32.mrf.mxu0 }
 0x3f4   : > { %v3738_v42 = vpop.f32.mrf.mxu1  ;;  %v1769_v43 = vsel %vm1391_vm4, %v1570_v46, -inf }
 0x3f5   : > { %v1778_v47 = vsel %vm1391_vm4, %v3738_v42, -inf  ;;  %1770 = vmax.xlane.f32.xlu0 %v1769_v43  ;;  %v3118_v48 = vpop.f32.mrf.mxu0 }
 0x3f6   : > { %v3136_v50 = vpop.f32.mrf.mxu1  ;;  %1779 = vmax.xlane.f32.xlu1 %v1778_v47 }
 0x3f7   : > { %v1573_v57 = vpop.f32.mrf.mxu0 }
 0x3f8   : > { %v1711_v58 = vpop.f32.mrf.mxu1 }
 0x3f9   : > { %v3119_v61 = vpop.f32.mrf.mxu0 }
 0x3fa   : > { %v3137_v59 = vpop.f32.mrf.mxu1 }
 0x3fb   : > { %v1662_v60 = vpop.f32.mrf.mxu0 }
 0x3fc   : > { %v1775_v62 = vsel %vm1391_vm4, %v1662_v60, -inf }
 0x3fd   : > { %1776 = vmax.xlane.f32.xlu0 %v1775_v62  ;;  %v3130_v0 = vpop.f32.mrf.mxu0 }
 0x3ff   : > { %v1665_v1 = vpop.f32.mrf.mxu0 }
 0x401   : > { %v3131_v4 = vpop.f32.mrf.mxu0 }
 0x403   : > { %v3744_v5 = vpop.f32.mrf.mxu0 }
 0x404   : > { %v1781_v6 = vsel %vm1391_vm4, %v3744_v5, -inf }
 0x405   : > { %1782 = vmax.xlane.f32.xlu0 %v1781_v6  ;;  %v3142_v16 = vpop.f32.mrf.mxu0 }
 0x407   : > { %1095 = vrot.lane.b32.xlu1 %v3535_v51, %s3404_s26  ;;  %v1757_v23 = vpop.f32.mrf.mxu0 }
 0x409   : > { %v3143_v30 = vpop.f32.mrf.mxu0 }
 0x40b   : > { %1099 = vrot.lane.b32.xlu1 %v3543_v53, %s3404_s26 }
 0x40f   : > { %1089 = vrot.lane.b32.xlu1 %v3529_v49, %s3404_s26 }
 0x41b   : > { %1091 = vrot.lane.b32.xlu0 %v3537_v52, %s3404_s26 }
 0x46e   : > { %v1768_v3 = vpop.xlane.xlu0 %1767  ;;  %v1762_v10 = vpop.xlane.xlu1 %1761 }
 0x46f   : > { %v1786_v11 = vsub.f32 %v1524_v25, %v1768_v3  ;;  %v1784_v12 = vsub.f32 %v1432_v14, %v1762_v10 }
 0x471   : > { %v1792_v17 = vmul.f32 1.442695, %v1784_v12  ;;  %v1796_v24 = vmul.f32 1.442695, %v1786_v11 }
 0x473   : > { %3306 = vpow2.f32 %v1792_v17 }
 0x474   : > { %3308 = vpow2.f32 %v1796_v24 }
 0x476   : > { %v1765_v51 = vpop.xlane.xlu0 %1764 }
 0x477   : > { %v1774_v18 = vpop.xlane.xlu1 %1773  ;;  %v1785_v7 = vsub.f32 %v1478_v34, %v1765_v51 }
 0x478   : > { %v1788_v19 = vsub.f32 %v1616_v35, %v1774_v18 }
 0x479   : > { %v1794_v53 = vmul.f32 1.442695, %v1785_v7 }
 0x47a   : > { %v1800_v20 = vmul.f32 1.442695, %v1788_v19 }
 0x47b   : > { %3310 = vpow2.f32 %v1794_v53 }
 0x47c   : > { %3312 = vpow2.f32 %v1800_v20 }
 0x47e   : > { %v1771_v49 = vpop.xlane.xlu0 %1770 }
 0x47f   : > { %v1787_v13 = vsub.f32 %v1570_v46, %v1771_v49  ;;  %v3762_v26 = vpop.xlane.xlu1 %1779 }
 0x480   : > { %v3756_v52 = vpop.eup %3306 }
 0x481   : > { %v1798_v21 = vmul.f32 1.442695, %v1787_v13  ;;  %v1808_v14 = vsel %vm1391_vm4, %v3756_v52, 0.0  ;;  %v3760_v25 = vpop.eup %3308 }
 0x482   : > { %1809 = vadd.xlane.f32.xlu1 %v1808_v14  ;;  %v1814_v27 = vsel %vm1391_vm4, %v3760_v25, 0.0 }
 0x483   : > { %3314 = vpow2.f32 %v1798_v21  ;;  %v1096_v34 = vpop.permute.xlu1 %1095 }
 0x484   : > { %v1111_v38 = vcombine.low %v1088_v2, %v1096_v34  ;;  %v1112_v39 = vcombine.high %v1088_v2, %v1096_v34 }
 0x486   : > { %v1777_v15 = vpop.xlane.xlu0 %1776  ;;  %1815 = vadd.xlane.f32.xlu1 %v1814_v27  ;;  %v1119_v43 = vrot.slane %v1111_v38, %v3565_v63  ;;  %v1126_v47 = vrot.slane %v1112_v39, %v3565_v63  ;;  %v1790_v27 = vsub.f32 %v3738_v42, %v3762_v26 }
 0x487   : > { %v1789_v28 = vsub.f32 %v1662_v60, %v1777_v15  ;;  %v1100_v41 = vpop.permute.xlu1 %1099 }
 0x488   : > { %v3766_v29 = vpop.eup %3310 }
 0x489   : > { %v1802_v31 = vmul.f32 1.442695, %v1789_v28  ;;  %v1811_v32 = vsel %vm1391_vm4, %v3766_v29, 0.0  ;;  %v3770_v33 = vpop.eup %3312 }
 0x48a   : > { %1812 = vadd.xlane.f32.xlu0 %v1811_v32  ;;  %v1820_v35 = vsel %vm1391_vm4, %v3770_v33, 0.0 }
 0x48b   : > { %3316 = vpow2.f32 %v1802_v31  ;;  %v1804_v31 = vmul.f32 1.442695, %v1790_v27  ;;  %v1090_v39 = vpop.permute.xlu1 %1089 }
 0x48d   : > { %3318 = vpow2.f32 %v1804_v31 }
 0x48e   : > { %1821 = vadd.xlane.f32.xlu0 %v1820_v35  ;;  %v1783_v36 = vpop.xlane.xlu0 %1782 }
 0x48f   : > { %v1791_v32 = vsub.f32 %v3744_v5, %v1783_v36 }
 0x490   : > { %v3774_v37 = vpop.eup %3314 }
 0x491   : > { %v1817_v40 = vsel %vm1391_vm4, %v3774_v37, 0.0  ;;  %v1806_v34 = vmul.f32 1.442695, %v1791_v32 }
 0x492   : > { %1818 = vadd.xlane.f32.xlu0 %v1817_v40  ;;  %v1092_v44 = vpop.permute.xlu0 %1091 }
 0x493   : > { %v1127_v45 = vcombine.low %v1092_v44, %v1100_v41  ;;  %v1128_v46 = vcombine.high %v1092_v44, %v1100_v41  ;;  %3320 = vpow2.f32 %v1806_v34 }
 0x495   : > { %v1135_v48 = vrot.slane %v1127_v45, %v3565_v63  ;;  %v1142_v50 = vrot.slane %v1128_v46, %v3565_v63 }
 0x497   : > { %v1143_v57 = vcombine.low %v1119_v43, %v1135_v48  ;;  %v1144_v58 = vcombine.high %v1119_v43, %v1135_v48  ;;  %v1159_v61 = vcombine.low %v1126_v47, %v1142_v50  ;;  %v1160_v59 = vcombine.high %v1126_v47, %v1142_v50  ;;  %1097 = vrot.lane.b32.xlu1 %v3551_v55, %s3404_s26 }
 0x498   : > { %v3782_v60 = vpop.eup %3316 }
 0x499   : > { %v1151_v62 = vrot.slane %v1143_v57, %v3575_v8  ;;  %v1158_v0 = vrot.slane %v1144_v58, %v3575_v8  ;;  %v1167_v1 = vrot.slane %v1159_v61, %v3575_v8  ;;  %v1174_v4 = vrot.slane %v1160_v59, %v3575_v8 }
 0x49a   : > { %v1823_v6 = vsel %vm1391_vm4, %v3782_v60, 0.0  ;;  %v3811_v35 = vpop.eup %3318 }
 0x49b   : > { %v1247_v16 = vcombine.low %v1151_v62, %v1158_v0  ;;  %v2991_v23 = vcombine.high %v1151_v62, %v1158_v0  ;;  %v1263_v30 = vcombine.low %v1167_v1, %v1174_v4  ;;  %v2992_v2 = vcombine.high %v1167_v1, %v1174_v4  ;;  %1824 = vadd.xlane.f32.xlu0 %v1823_v6 }
 0x49c   : > { %1101 = vrot.lane.b32.xlu1 %v3557_v56, %s3404_s26  ;;  %v1826_v42 = vsel %vm1391_vm4, %v3811_v35, 0.0 }
 0x49d   : > { %v1254_v55 = vrot.slane %v1247_v16, %v3565_v63  ;;  %v1262_v3 = vrot.slane %v2991_v23, %v3565_v63  ;;  %v1270_v10 = vrot.slane %v1263_v30, %v3565_v63  ;;  %v1278_v11 = vrot.slane %v2992_v2, %v3565_v63 }
 0x49f   : > { %v1279_v12 = vcombine.low %v1254_v55, %v1262_v3  ;;  %v1295_v17 = vcombine.low %v1270_v10, %v1278_v11  ;;  %v1280_v24 = vcombine.high %v1254_v55, %v1262_v3  ;;  %v1296_v51 = vcombine.high %v1270_v10, %v1278_v11 }
 0x4a0   : > { %v3815_v26 = vpop.eup %3320 }
 0x4a1   : > { %v1287_v18 = vrot.slane %v1279_v12, %v3575_v8  ;;  %v1303_v7 = vrot.slane %v1295_v17, %v3575_v8  ;;  %v1294_v19 = vrot.slane %v1280_v24, %v3575_v8  ;;  %v1310_v56 = vrot.slane %v1296_v51, %v3575_v8 }
 0x4a2   : > { %v1829_v38 = vsel %vm1391_vm4, %v3815_v26, 0.0 }
 0x4a3   : > { %v1311_v53 = vcombine.low %v1287_v18, %v1303_v7  ;;  %v1312_v20 = vcombine.high %v1287_v18, %v1303_v7  ;;  %v1313_v49 = vcombine.low %v1294_v19, %v1310_v56  ;;  %v1314_v13 = vcombine.high %v1294_v19, %v1310_v56 }
 0x4a5   : > { %v1383_v21 = vpack.c.bf16 %v1311_v53, %v1311_v53  ;;  %v1384_v14 = vpack.c.bf16 %v1312_v20, %v1312_v20  ;;  %v1385_v46 = vpack.c.bf16 %v1313_v49, %v1313_v49  ;;  %v1386_v61 = vpack.c.bf16 %v1314_v13, %v1314_v13 }
 0x4a7   : > { %v1861_v15 = vsel %vm1859_vm5, %v1383_v21, 0  ;;  %v1907_v28 = vsel %vm1859_vm5, %v1384_v14, 0  ;;  %v1953_v48 = vsel %vm1859_vm5, %v1385_v46, 0  ;;  %v1999_v4 = vsel %vm1859_vm5, %v1386_v61, 0 }
 0x4a8   : > { %3145 = vmatpush3.bf16.msra.mxu1 %v1861_v15  ;;  %3151 = vmatpush3.bf16.msra.mxu0 %v1907_v28 }
 0x4a9   : > { %3156 = vmatprep.subr.bf16.mxu1 %v3402_v22  ;;  %3162 = vmatprep.subr.bf16.mxu0 %v3402_v22 }
 0x4b1   : > { %1093 = vrot.lane.b32.xlu0 %v3549_v54, %s3404_s26 }
 0x4c0   : > { %1827 = vadd.xlane.f32.xlu1 %v1826_v42 }
 0x4d0   : > { %1830 = vadd.xlane.f32.xlu0 %v1829_v38 }
 0x50b   : > { %v1810_v40 = vpop.xlane.xlu1 %1809 }
 0x50c   : > { %3322 = vrcp.f32 %v1810_v40 }
 0x50f   : > { %v1816_v54 = vpop.xlane.xlu1 %1815 }
 0x510   : > { %3324 = vrcp.f32 %v1816_v54 }
 0x513   : > { %v1813_v5 = vpop.xlane.xlu0 %1812  ;;  %v1098_v58 = vpop.permute.xlu1 %1097 }
 0x514   : > { %3326 = vrcp.f32 %v1813_v5  ;;  %v1179_v1 = vcombine.low %v1090_v39, %v1098_v58  ;;  %v1180_v6 = vcombine.high %v1090_v39, %v1098_v58 }
 0x516   : > { %v1187_v2 = vrot.slane %v1179_v1, %v3565_v63  ;;  %v1194_v3 = vrot.slane %v1180_v6, %v3565_v63 }
 0x517   : > { %v1822_v36 = vpop.xlane.xlu0 %1821  ;;  %v1102_v16 = vpop.permute.xlu1 %1101 }
 0x519   : > { %v3323_v41 = vpop.eup %3322 }
 0x51a   : > { %v1840_v45 = vmul.f32 %v3323_v41, %v3756_v52 }
 0x51b   : > { %v1819_v44 = vpop.xlane.xlu0 %1818 }
 0x51c   : > { %3328 = vrcp.f32 %v1819_v44  ;;  %v1848_v43 = vpack.c.bf16 %v1840_v45, %v1840_v45 }
 0x51d   : > { %v3325_v47 = vpop.eup %3324  ;;  %3330 = vrcp.f32 %v1822_v36 }
 0x51e   : > { %3147 = vmatmul.mubr.msk.bf16.vlgmr.msra.gmra.mxu1 %vm1391_vm4, %v1848_v43  ;;  %v1842_v57 = vmul.f32 %v3325_v47, %v3760_v25 }
 0x51f   : > { %3157 = vmatpush3.bf16.msra.mxu1 %v1953_v48  ;;  %3158 = vmatprep.mubr.msk.bf16.mxu1 %vm3403_vm2, %v3402_v22 }
 0x520   : > { %3168 = vmatprep.subr.bf16.mxu1 %v3402_v22  ;;  %v1850_v0 = vpack.c.bf16 %v1842_v57, %v1842_v57 }
 0x521   : > { %v3327_v50 = vpop.eup %3326 }
 0x522   : > { %v1841_v52 = vmul.f32 %v3327_v50, %v3766_v29 }
 0x524   : > { %v1825_v59 = vpop.xlane.xlu0 %1824  ;;  %v1849_v62 = vpack.c.bf16 %v1841_v52, %v1841_v52 }
 0x525   : > { %3332 = vrcp.f32 %v1825_v59 }
 0x526   : > { %3153 = vmatmul.mubr.msk.bf16.vlgmr.msra.gmra.mxu0 %vm1391_vm4, %v1849_v62  ;;  %3159 = vmatmul.mubr.msk.bf16.vlgmr.msra.gmra.mxu1 %vm1391_vm4, %v1850_v0 }
 0x527   : > { %3163 = vmatpush3.bf16.msra.mxu0 %v1999_v4  ;;  %3164 = vmatprep.mubr.msk.bf16.mxu0 %vm3403_vm2, %v3402_v22 }
 0x528   : > { %v1094_v25 = vpop.permute.xlu0 %1093  ;;  %3174 = vmatprep.subr.bf16.mxu0 %v3402_v22  ;;  %3170 = vmatprep.mubr.msk.bf16.mxu1 %vm3403_vm2, %v3402_v22 }
 0x529   : > { %v3329_v29 = vpop.eup %3328  ;;  %v1195_v23 = vcombine.low %v1094_v25, %v1102_v16  ;;  %v1196_v30 = vcombine.high %v1094_v25, %v1102_v16 }
 0x52a   : > { %v1843_v55 = vmul.f32 %v3329_v29, %v3774_v37  ;;  %v3331_v42 = vpop.eup %3330 }
 0x52b   : > { %v1203_v10 = vrot.slane %v1195_v23, %v3565_v63  ;;  %v1210_v11 = vrot.slane %v1196_v30, %v3565_v63  ;;  %v1844_v47 = vmul.f32 %v3331_v42, %v3770_v33 }
 0x52c   : > { %v1851_v12 = vpack.c.bf16 %v1843_v55, %v1843_v55 }
 0x52d   : > { %v1211_v17 = vcombine.low %v1187_v2, %v1203_v10  ;;  %v1212_v24 = vcombine.high %v1187_v2, %v1203_v10  ;;  %v1227_v51 = vcombine.low %v1194_v3, %v1210_v11  ;;  %v1228_v18 = vcombine.high %v1194_v3, %v1210_v11 }
 0x52e   : > { %3165 = vmatmul.mubr.msk.bf16.vlgmr.msra.gmra.mxu0 %vm1391_vm4, %v1851_v12  ;;  %v1852_v61 = vpack.c.bf16 %v1844_v47, %v1844_v47 }
 0x52f   : > { %v1219_v7 = vrot.slane %v1211_v17, %v3575_v8  ;;  %v1226_v19 = vrot.slane %v1212_v24, %v3575_v8  ;;  %v1235_v37 = vrot.slane %v1227_v51, %v3575_v8  ;;  %v1242_v56 = vrot.slane %v1228_v18, %v3575_v8  ;;  %3176 = vmatprep.mubr.msk.bf16.mxu0 %vm3403_vm2, %v3402_v22 }
 0x531   : > { %v1315_v53 = vcombine.low %v1219_v7, %v1226_v19  ;;  %v2993_v20 = vcombine.high %v1219_v7, %v1226_v19  ;;  %v1331_v49 = vcombine.low %v1235_v37, %v1242_v56  ;;  %v2994_v13 = vcombine.high %v1235_v37, %v1242_v56 }
 0x532   : > { %v3333_v5 = vpop.eup %3332 }
 0x533   : > { %v1322_v21 = vrot.slane %v1315_v53, %v3565_v63  ;;  %v1330_v14 = vrot.slane %v2993_v20, %v3565_v63  ;;  %v1338_v27 = vrot.slane %v1331_v49, %v3565_v63  ;;  %v1346_v15 = vrot.slane %v2994_v13, %v3565_v63 }
 0x534   : > { %v1845_v48 = vmul.f32 %v3333_v5, %v3782_v60 }
 0x535   : > { %v1347_v28 = vcombine.low %v1322_v21, %v1330_v14  ;;  %v1363_v31 = vcombine.low %v1338_v27, %v1346_v15  ;;  %v1348_v32 = vcombine.high %v1322_v21, %v1330_v14  ;;  %v1364_v34 = vcombine.high %v1338_v27, %v1346_v15 }
 0x536   : > { %v1853_v59 = vpack.c.bf16 %v1845_v48, %v1845_v48 }
 0x537   : > { %v1355_v38 = vrot.slane %v1347_v28, %v3575_v8  ;;  %v1371_v39 = vrot.slane %v1363_v31, %v3575_v8  ;;  %v1362_v40 = vrot.slane %v1348_v32, %v3575_v8  ;;  %v1378_v54 = vrot.slane %v1364_v34, %v3575_v8 }
 0x539   : > { %v1379_v36 = vcombine.low %v1355_v38, %v1371_v39  ;;  %v1380_v41 = vcombine.high %v1355_v38, %v1371_v39  ;;  %v1381_v44 = vcombine.low %v1362_v40, %v1378_v54  ;;  %v1382_v45 = vcombine.high %v1362_v40, %v1378_v54 }
 0x53b   : > { %v1387_v46 = vpack.c.bf16 %v1379_v36, %v1379_v36  ;;  %v1388_v43 = vpack.c.bf16 %v1380_v41, %v1380_v41  ;;  %v1389_v58 = vpack.c.bf16 %v1381_v44, %v1381_v44  ;;  %v1390_v52 = vpack.c.bf16 %v1382_v45, %v1382_v45 }
 0x53d   : > { %v2045_v50 = vsel %vm1859_vm5, %v1387_v46, 0  ;;  %v2091_v57 = vsel %vm1859_vm5, %v1388_v43, 0  ;;  %v2137_v33 = vsel %vm1859_vm5, %v1389_v58, 0  ;;  %v2183_v60 = vsel %vm1859_vm5, %v1390_v52, 0 }
 0x53e   : > { %3169 = vmatpush3.bf16.msra.mxu1 %v2045_v50  ;;  %3175 = vmatpush3.bf16.msra.mxu0 %v2091_v57 }
 0x53f   : > { %3180 = vmatprep.subr.bf16.mxu1 %v3402_v22  ;;  %3186 = vmatprep.subr.bf16.mxu0 %v3402_v22 }
 0x541   : > { %3171 = vmatmul.mubr.msk.bf16.vlgmr.msra.gmra.mxu1 %vm1391_vm4, %v1852_v61  ;;  %3177 = vmatmul.mubr.msk.bf16.vlgmr.msra.gmra.mxu0 %vm1391_vm4, %v1853_v59 }
 0x542   : > { %3181 = vmatpush3.bf16.msra.mxu1 %v2137_v33  ;;  %3187 = vmatpush3.bf16.msra.mxu0 %v2183_v60 }
 0x543   : > { %3182 = vmatprep.mubr.msk.bf16.mxu1 %vm3403_vm2, %v3402_v22  ;;  %3188 = vmatprep.mubr.msk.bf16.mxu0 %vm3403_vm2, %v3402_v22 }
 0x544   : > { %3192 = vmatprep.subr.bf16.mxu1 %v3402_v22  ;;  %3200 = vmatprep.subr.bf16.mxu0 %v3402_v22 }
 0x549   : > { %v1828_v62 = vpop.xlane.xlu1 %1827 }
 0x54a   : > { %3334 = vrcp.f32 %v1828_v62 }
 0x557   : > { %v3335_v0 = vpop.eup %3334 }
 0x558   : > { %v1846_v1 = vmul.f32 %v3335_v0, %v3811_v35 }
 0x559   : > { %v1831_v4 = vpop.xlane.xlu0 %1830 }
 0x55a   : > { %3336 = vrcp.f32 %v1831_v4  ;;  %v1854_v6 = vpack.c.bf16 %v1846_v1, %v1846_v1 }
 0x55c   : > { %3183 = vmatmul.mubr.msk.bf16.vlgmr.msra.gmra.mxu1 %vm1391_vm4, %v1854_v6 }
 0x55d   : > { %3196 = vmatprep.mubr.msk.bf16.mxu1 %vm3403_vm2, %v3402_v22 }
 0x567   : > { %v3337_v16 = vpop.eup %3336 }
 0x568   : > { %v1847_v25 = vmul.f32 %v3337_v16, %v3815_v26 }
 0x56a   : > { %v1855_v29 = vpack.c.bf16 %v1847_v25, %v1847_v25 }
 0x56c   : > { %3189 = vmatmul.mubr.msk.bf16.vlgmr.msra.gmra.mxu0 %vm1391_vm4, %v1855_v29 }
 0x56d   : > { %3204 = vmatprep.mubr.msk.bf16.mxu0 %vm3403_vm2, %v3402_v22 }
 0x5de   : > { %v1897_v23 = vpop.f32.mrf.mxu1 }
 0x5e0   : > { %v3148_v30 = vpop.f32.mrf.mxu1 }
 0x5e2   : > { %v1900_v35 = vpop.f32.mrf.mxu1 }
 0x5e4   : > { %v3149_v2 = vpop.f32.mrf.mxu1 }
 0x5e6   : > { %v1943_v55 = vpop.f32.mrf.mxu0  ;;  %v1989_v3 = vpop.f32.mrf.mxu1 }
 0x5e7   : > { %v2225_v10 = vcombine.low %v1897_v23, %v1989_v3  ;;  %v2226_v11 = vcombine.high %v1897_v23, %v1989_v3 }
 0x5e8   : > { %v3154_v12 = vpop.f32.mrf.mxu0  ;;  %v3160_v17 = vpop.f32.mrf.mxu1 }
 0x5e9   : > { %v2233_v53 = vrot.slane %v2225_v10, %v3565_v63  ;;  %v2240_v20 = vrot.slane %v2226_v11, %v3565_v63 }
 0x5ea   : > { %v1946_v24 = vpop.f32.mrf.mxu0  ;;  %v1992_v51 = vpop.f32.mrf.mxu1 }
 0x5ec   : > { %v3155_v18 = vpop.f32.mrf.mxu0  ;;  %v3161_v26 = vpop.f32.mrf.mxu1 }
 0x5ee   : > { %v2035_v7 = vpop.f32.mrf.mxu0 }
 0x5ef   : > { %v2241_v19 = vcombine.low %v1943_v55, %v2035_v7  ;;  %v2242_v37 = vcombine.high %v1943_v55, %v2035_v7 }
 0x5f0   : > { %v3166_v56 = vpop.f32.mrf.mxu0 }
 0x5f1   : > { %v2249_v49 = vrot.slane %v2241_v19, %v3565_v63  ;;  %v2256_v13 = vrot.slane %v2242_v37, %v3565_v63 }
 0x5f2   : > { %v2038_v21 = vpop.f32.mrf.mxu0 }
 0x5f3   : > { %v2257_v14 = vcombine.low %v2233_v53, %v2249_v49  ;;  %v2258_v27 = vcombine.high %v2233_v53, %v2249_v49  ;;  %v2273_v15 = vcombine.low %v2240_v20, %v2256_v13  ;;  %v2274_v28 = vcombine.high %v2240_v20, %v2256_v13 }
 0x5f4   : > { %v3167_v31 = vpop.f32.mrf.mxu0 }
 0x5f5   : > { %v2265_v32 = vrot.slane %v2257_v14, %v3575_v8  ;;  %v2272_v34 = vrot.slane %v2258_v27, %v3575_v8  ;;  %v2281_v42 = vrot.slane %v2273_v15, %v3575_v8  ;;  %v2288_v38 = vrot.slane %v2274_v28, %v3575_v8 }
 0x5f7   : > { %v2361_v39 = vcombine.low %v2265_v32, %v2272_v34  ;;  %v3011_v40 = vcombine.high %v2265_v32, %v2272_v34  ;;  %v2377_v54 = vcombine.low %v2281_v42, %v2288_v38  ;;  %v3012_v5 = vcombine.high %v2281_v42, %v2288_v38  ;;  %v3290_v32 = vld [vmem:[%s3478_s10 + $0x8] sm:$0xff]  }
 0x5f8   : > { %3193 = vmatpush3.bf16.msra.mxu1 %v3290_v32 }
 0x5f9   : > { %v2368_v36 = vrot.slane %v2361_v39, %v3565_v63  ;;  %v2376_v41 = vrot.slane %v3011_v40, %v3565_v63  ;;  %v2384_v44 = vrot.slane %v2377_v54, %v3565_v63  ;;  %v2392_v45 = vrot.slane %v3012_v5, %v3565_v63  ;;  %3194 = vmatprep.subr.bf16.mxu1 %v3402_v22 }
 0x5fb   : > { %v2394_v46 = vcombine.high %v2368_v36, %v2376_v41  ;;  %v2410_v43 = vcombine.high %v2384_v44, %v2392_v45  ;;  %v2393_v47 = vcombine.low %v2368_v36, %v2376_v41  ;;  %v2409_v48 = vcombine.low %v2384_v44, %v2392_v45  ;;  %v3291_v41 = vld [vmem:[%s3478_s10] sm:$0xff]   ;;  %s3411_s10 = smov 8  }
 0x5fc   : > { %3195 = vmatpush3.bf16.msra.mxu1 %v3291_v41 }
 0x5fd   : > { %v3892_v50 = vrot.slane %v2394_v46, %v3575_v8  ;;  %v3895_v57 = vrot.slane %v2410_v43, %v3575_v8  ;;  %v3898_v58 = vrot.slane %v2393_v47, %v3575_v8  ;;  %v3901_v52 = vrot.slane %v2409_v48, %v3575_v8  ;;  %3208 = vmatprep.subr.bf16.mxu1 %v3402_v22 }
 0x5ff   : > { %v2427_v61 = vcombine.low %v3892_v50, %v3895_v57  ;;  %v2425_v59 = vcombine.low %v3898_v58, %v3901_v52  ;;  %v2426_v33 = vcombine.high %v3898_v58, %v3901_v52  ;;  %v2428_v60 = vcombine.high %v3892_v50, %v3895_v57 }
 0x601   : > { %v2081_v62 = vpop.f32.mrf.mxu1  ;;  %v2127_v0 = vpop.f32.mrf.mxu0 }
 0x603   : > { %v3172_v1 = vpop.f32.mrf.mxu1  ;;  %v3178_v4 = vpop.f32.mrf.mxu0 }
 0x605   : > { %v2084_v6 = vpop.f32.mrf.mxu1  ;;  %v2130_v16 = vpop.f32.mrf.mxu0 }
 0x607   : > { %v3173_v25 = vpop.f32.mrf.mxu1  ;;  %v3179_v29 = vpop.f32.mrf.mxu0 }
 0x61c   : > { %v2173_v23 = vpop.f32.mrf.mxu1 }
 0x61d   : > { %v2293_v55 = vcombine.low %v2081_v62, %v2173_v23  ;;  %v2294_v3 = vcombine.high %v2081_v62, %v2173_v23 }
 0x61e   : > { %v3184_v30 = vpop.f32.mrf.mxu1 }
 0x61f   : > { %v2301_v24 = vrot.slane %v2293_v55, %v3565_v63  ;;  %v2308_v51 = vrot.slane %v2294_v3, %v3565_v63 }
 0x620   : > { %v2176_v35 = vpop.f32.mrf.mxu1 }
 0x622   : > { %v3185_v2 = vpop.f32.mrf.mxu1 }
 0x62c   : > { %v2219_v10 = vpop.f32.mrf.mxu0 }
 0x62d   : > { %v2309_v11 = vcombine.low %v2127_v0, %v2219_v10  ;;  %v2310_v12 = vcombine.high %v2127_v0, %v2219_v10 }
 0x62e   : > { %v3190_v17 = vpop.f32.mrf.mxu0 }
 0x62f   : > { %v2317_v18 = vrot.slane %v2309_v11, %v3565_v63  ;;  %v2324_v26 = vrot.slane %v2310_v12, %v3565_v63 }
 0x630   : > { %v2222_v7 = vpop.f32.mrf.mxu0 }
 0x631   : > { %v2325_v19 = vcombine.low %v2301_v24, %v2317_v18  ;;  %v2326_v37 = vcombine.high %v2301_v24, %v2317_v18  ;;  %v2341_v56 = vcombine.low %v2308_v51, %v2324_v26  ;;  %v2342_v53 = vcombine.high %v2308_v51, %v2324_v26  ;;  %v3347_v24 = vld [vmem:[#allocation2] sm:$0xff] }
 0x632   : > { %v3191_v20 = vpop.f32.mrf.mxu0 }
 0x633   : > { %v2333_v49 = vrot.slane %v2325_v19, %v3575_v8  ;;  %v2340_v13 = vrot.slane %v2326_v37, %v3575_v8  ;;  %v2349_v21 = vrot.slane %v2341_v56, %v3575_v8  ;;  %v2356_v14 = vrot.slane %v2342_v53, %v3575_v8  ;;  %v3348_v37 = vld [vmem:[#allocation2 + $0x8] sm:$0xff] }
 0x635   : > { %v2429_v27 = vcombine.low %v2333_v49, %v2340_v13  ;;  %v3013_v15 = vcombine.high %v2333_v49, %v2340_v13  ;;  %v2445_v28 = vcombine.low %v2349_v21, %v2356_v14  ;;  %v3014_v31 = vcombine.high %v2349_v21, %v2356_v14 }
 0x637   : > { %v2436_v34 = vrot.slane %v2429_v27, %v3565_v63  ;;  %v2444_v42 = vrot.slane %v3013_v15, %v3565_v63  ;;  %v2452_v38 = vrot.slane %v2445_v28, %v3565_v63  ;;  %v2460_v39 = vrot.slane %v3014_v31, %v3565_v63 }
 0x639   : > { %v2462_v40 = vcombine.high %v2436_v34, %v2444_v42  ;;  %v2478_v54 = vcombine.high %v2452_v38, %v2460_v39  ;;  %v2461_v5 = vcombine.low %v2436_v34, %v2444_v42  ;;  %v2477_v36 = vcombine.low %v2452_v38, %v2460_v39  ;;  %v3292_v34 = vld [vmem:[%s3483_s13 + $0x8] sm:$0xff]   ;;  %v3293_v42 = vld [vmem:[%s3483_s13] sm:$0xff]   ;;  %s3414_s13 = smov [#allocation2]  }
 0x63a   : > { %3201 = vmatpush3.bf16.msra.mxu0 %v3292_v34  ;;  %s2849_s15 = sshll.u32 %s3414_s13, 4  ;;  %s2850_s15 = int_to_ptr.vmem [resolvable:$true] %s2849_s15 }
 0x63b   : > { %v2476_v44 = vrot.slane %v2462_v40, %v3575_v8  ;;  %v2492_v45 = vrot.slane %v2478_v54, %v3575_v8  ;;  %v2469_v46 = vrot.slane %v2461_v5, %v3575_v8  ;;  %v2485_v43 = vrot.slane %v2477_v36, %v3575_v8  ;;  %v3936_v8 = vld [vmem:[%s3493_s20] sm:$0xf]  ;;  %3202 = vmatprep.subr.bf16.mxu0 %v3402_v22  ;;  %s3349_s17 = scalar_lea.vmem %s2850_s15, 256  ;;  %p3356_p10 = scmp.lt.s32.totalorder %s2850_s15, %s2850_s15 }
 0x63c   : > { %p3350_p7 = scmp.ne.s32.totalorder %s2850_s15, %s3349_s17  ;;  %p3357_p11 = scmp.lt.s32.totalorder %s3349_s17, %s3349_s17 }
 0x63d   : > { %v2495_v63 = vcombine.low %v2476_v44, %v2492_v45  ;;  %v2494_v47 = vcombine.high %v2469_v46, %v2485_v43  ;;  %v2493_v48 = vcombine.low %v2469_v46, %v2485_v43  ;;  %v2496_v1 = vcombine.high %v2476_v44, %v2492_v45 }
 0x63e   : > { %3203 = vmatpush3.bf16.msra.mxu0 %v3293_v42  ;;  %p3351_p8 = pnand %p3350_p7, %p3994_p6  ;;  %p3358_p12 = por %p3357_p11, %p3356_p10 }
 0x63f   : > { %v3278_v62 = vpack.i.bf16 %v2495_v63, %v2427_v61  ;;  %v3273_v0 = vpack.i.bf16 %v2494_v47, %v2426_v33  ;;  %v3283_v4 = vpack.i.bf16 %v2496_v1, %v2428_v60 }
 0x640   : > { %p3352_p9 = pneg %p3351_p8 }
 0x641   : > { %3279 = vrot.lane.b32.xlu1 %v3278_v62, %s3410_s11  ;;  %3274 = vrot.lane.b32.xlu0 %v3273_v0, %s3411_s10 }
 0x642   : > { %p3359_p13 = pnand %p3358_p12, %p3352_p9 }
 0x645   : > { %3284 = vrot.lane.b32.xlu1 %v3283_v4, %s3412_s12  ;;  %2534 = vrot.lane.b32.xlu0 %v3936_v8, %s3401_s21 }
 0x6b3   : > { %v3280_v6 = vpop.permute.xlu1 %3279  ;;  %v3275_v61 = vpop.permute.xlu0 %3274 }
 0x6b4   : > { %v3277_v33 = vunpack.i.h.bf16 %v3275_v61  ;;  %v3276_v16 = vunpack.i.l.bf16 %v3275_v61  ;;  %v3282_v25 = vunpack.i.h.bf16 %v3280_v6  ;;  %v3281_v29 = vunpack.i.l.bf16 %v3280_v6 }
 0x6b6   : > { %v2521_v23 = vsel %vm1391_vm4, %v2425_v59, %v3276_v16  ;;  %v2522_v50 = vsel %vm1391_vm4, %v2493_v48, %v3277_v33  ;;  %v3294_v16 = vld [vmem:[%s3488_s16 + $0x38] sm:$0xff]  }
 0x6b7   : > { %v3285_v57 = vpop.permute.xlu1 %3284  ;;  %v2524_v35 = vsel %vm2523_vm6, %v2521_v23, %v3281_v29  ;;  %v2525_v2 = vsel %vm2523_vm6, %v2522_v50, %v3282_v25  ;;  %v2535_v58 = vpop.permute.xlu0 %2534  ;;  %v3295_v25 = vld [vmem:[%s3488_s16 + $0x30] sm:$0xff]   ;;  %v3296_v29 = vld [vmem:[%s3488_s16 + $0x28] sm:$0xff]   ;;  %v3297_v23 = vld [vmem:[%s3488_s16 + $0x20] sm:$0xff]  }
 0x6b8   : > { %v3287_v60 = vunpack.i.h.bf16 %v3285_v57  ;;  %v3286_v30 = vunpack.i.l.bf16 %v3285_v57  ;;  %v2536_v52 = vrot.slane %v2535_v58, 1  ;;  %v3298_v50 = vld [vmem:[%s3488_s16 + $0x18] sm:$0xff]   ;;  %v3299_v57 = vld [vmem:[%s3488_s16 + $0x10] sm:$0xff]  }
 0x6ba   : > { %v2527_v55 = vsel %vm2526_vm7, %v2524_v35, %v3286_v30  ;;  %v2528_v3 = vsel %vm2526_vm7, %v2525_v2, %v3287_v60  ;;  %v2540_v59 = vrot.slane %v2536_v52, %v3507_v9  ;;  %v3300_v60 = vld [vmem:[%s3488_s16 + $0x8] sm:$0xff]   ;;  %v3301_v30 = vld [vmem:[%s3488_s16] sm:$0xff]   ;;  %v2651_v35 = vrot.slane %v3936_v8, 2 }
 0x6bb   : > { %v2529_v10 = vpack.c.bf16 %v2528_v3, %v2527_v55 }
 0x6bc   : > { %v2655_v55 = vrot.slane %v2651_v35, %v3507_v9 }
 0x6bd   : > { %3197 = vmatmul.mubr.msk.bf16.vlgmr.msra.gmra.mxu1 %vm370_vm1, %v2529_v10 }
 0x6be   : > { %3224 = vmatprep.mubr.msk.bf16.mxu1 %vm3403_vm2, %v3402_v22  ;;  %3209 = vmatpush3.bf16.msra.mxu1 %v3294_v16 }
 0x6bf   : > { %3210 = vmatprep.subr.bf16.mxu1 %v3402_v22 }
 0x6c2   : > { %3211 = vmatpush3.bf16.msra.mxu1 %v3295_v25 }
 0x6c3   : > { %3212 = vmatprep.subr.bf16.mxu1 %v3402_v22 }
 0x6c6   : > { %3213 = vmatpush3.bf16.msra.mxu1 %v3296_v29 }
 0x6c7   : > { %3214 = vmatprep.subr.bf16.mxu1 %v3402_v22 }
 0x6ca   : > { %3215 = vmatpush3.bf16.msra.mxu1 %v3297_v23 }
 0x6cb   : > { %3216 = vmatprep.subr.bf16.mxu1 %v3402_v22 }
 0x6ce   : > { %3217 = vmatpush3.bf16.msra.mxu1 %v3298_v50 }
 0x6cf   : > { %3218 = vmatprep.subr.bf16.mxu1 %v3402_v22 }
 0x6d2   : > { %3219 = vmatpush3.bf16.msra.mxu1 %v3299_v57 }
 0x6d3   : > { %3220 = vmatprep.subr.bf16.mxu1 %v3402_v22 }
 0x6d6   : > { %3221 = vmatpush3.bf16.msra.mxu1 %v3300_v60 }
 0x6d7   : > { %3222 = vmatprep.subr.bf16.mxu1 %v3402_v22 }
 0x6da   : > { %3223 = vmatpush3.bf16.msra.mxu1 %v3301_v30 }
 0x77d   : > { %v2591_v11 = vpop.f32.mrf.mxu1 }
 0x77e   : > { %v2592_v12 = vadd.f32 %v2591_v11, %v2540_v59 }
 0x77f   : > { %v3198_v17 = vpop.f32.mrf.mxu1 }
 0x780   : > { %v3949_v51 = vadd.f32 %v3347_v24, %v2592_v12 }
 0x781   : > { %v2594_v18 = vpop.f32.mrf.mxu1 }
 0x782   : > { %v2595_v26 = vadd.f32 %v2594_v18, %v2540_v59  ;;  %v2600_v7 = vsel %vm370_vm1, %v3949_v51, 0.0 }
 0x783   : > { %2601 = vadd.xlane.f32.xlu1 %v2600_v7  ;;  %v3199_v19 = vpop.f32.mrf.mxu1 }
 0x784   : > { %v3953_v56 = vadd.f32 %v3348_v37, %v2595_v26  ;;  %v2830_v19 = vrot.slane %v3936_v8, 3 }
 0x786   : > { %v2603_v53 = vsel %vm370_vm1, %v3953_v56, 0.0  ;;  %v2834_v37 = vrot.slane %v2830_v19, %v3507_v9 }
 0x787   : > { %2604 = vadd.xlane.f32.xlu0 %v2603_v53 }
 0x794   : > { %2626 = vrot.lane.b32.xlu1 %v3936_v8, %s3404_s26 }
 0x80c   : > { %v2602_v20 = vpop.xlane.xlu1 %2601 }
 0x80d   : > { %v2606_v49 = vmul.f32 0.03125, %v2602_v20 }
 0x80f   : > { %v2608_v13 = vsub.f32 %v3949_v51, %v2606_v49 }
 0x810   : > { %v2605_v21 = vpop.xlane.xlu0 %2604  ;;  %v2627_v41 = vpop.permute.xlu1 %2626 }
 0x811   : > { %v2607_v14 = vmul.f32 0.03125, %v2605_v21  ;;  %v2610_v27 = vmul.f32 %v2608_v13, %v2608_v13  ;;  %v2628_v44 = vrot.slane %v2627_v41, 1 }
 0x813   : > { %v2609_v15 = vsub.f32 %v3953_v56, %v2607_v14  ;;  %v2612_v28 = vsel %vm370_vm1, %v2610_v27, 0.0  ;;  %v2632_v63 = vrot.slane %v2628_v44, %v3507_v9 }
 0x814   : > { %2613 = vadd.xlane.f32.xlu0 %v2612_v28 }
 0x815   : > { %v2611_v31 = vmul.f32 %v2609_v15, %v2609_v15 }
 0x817   : > { %v2615_v32 = vsel %vm370_vm1, %v2611_v31, 0.0 }
 0x818   : > { %2616 = vadd.xlane.f32.xlu0 %v2615_v32 }
 0x82e   : > { %2636 = vrot.lane.b32.xlu0 %v3936_v8, %s3413_s14 }
 0x89d   : > { %v2614_v38 = vpop.xlane.xlu0 %2613 }
 0x89e   : > { %v2618_v39 = vmul.f32 0.03125, %v2614_v38 }
 0x8a0   : > { %v2620_v40 = vadd.f32 1e-05, %v2618_v39 }
 0x8a1   : > { %v2617_v54 = vpop.xlane.xlu0 %2616 }
 0x8a2   : > { %3338 = vrsqrt.f32 %v2620_v40  ;;  %v2619_v5 = vmul.f32 0.03125, %v2617_v54 }
 0x8a4   : > { %v2621_v36 = vadd.f32 1e-05, %v2619_v5 }
 0x8a5   : > { %v2637_v45 = vpop.permute.xlu0 %2636 }
 0x8a6   : > { %3340 = vrsqrt.f32 %v2621_v36  ;;  %v2638_v47 = vrot.slane %v2637_v45, 1 }
 0x8a8   : > { %v2642_v1 = vrot.slane %v2638_v47, %v3507_v9 }
 0x8af   : > { %v3339_v46 = vpop.eup %3338 }
 0x8b0   : > { %v2624_v43 = vmul.f32 %v3339_v46, %v2608_v13 }
 0x8b2   : > { %v2634_v0 = vmul.f32 %v2632_v63, %v2624_v43 }
 0x8b3   : > { %v3341_v48 = vpop.eup %3340 }
 0x8b4   : > { %v2625_v62 = vmul.f32 %v3341_v48, %v2609_v15  ;;  %v2644_v6 = vadd.f32 %v2642_v1, %v2634_v0 }
 0x8b6   : > { %v2635_v4 = vmul.f32 %v2632_v63, %v2625_v62 }
 0x8b8   : > { %v2645_v61 = vadd.f32 %v2642_v1, %v2635_v4 }
 0x8ba   : > { %v2646_v33 = vpack.c.bf16 %v2645_v61, %v2644_v6 }
 0x8bc   : > { %3205 = vmatmul.mubr.msk.bf16.vlgmr.msra.gmra.mxu0 %vm370_vm1, %v2646_v33 }
 0x97c   : > { %v2706_v2 = vpop.f32.mrf.mxu0 }
 0x97d   : > { %v2707_v58 = vadd.f32 %v2706_v2, %v2655_v55 }
 0x97e   : > { %v3206_v3 = vpop.f32.mrf.mxu0 }
 0x980   : > { %v2709_v10 = vpop.f32.mrf.mxu0 }
 0x981   : > { %v2710_v52 = vadd.f32 %v2709_v10, %v2655_v55 }
 0x982   : > { %v3207_v59 = vpop.f32.mrf.mxu0 }
 0x983   : > { %v2713_v11 = vpack.c.bf16 %v2710_v52, %v2707_v58 }
 0x985   : > { %v3021_v12 = vmul.bf16 3218784218, %v2713_v11 }
 0x987   : > { %v2717_v17 = vmul.bf16 1069105081, %v3021_v12 }
 0x989   : > { %3342 = vpow.bf16 %v2717_v17 }
 0x997   : > { %v3343_v24 = vpop.eup %3342 }
 0x998   : > { %v2719_v18 = vadd.bf16 1065369472, %v3343_v24 }
 0x99a   : > { %3344 = vrcp.bf16 %v2719_v18 }
 0x9a8   : > { %v3345_v22 = vpop.eup %3344 }
 0x9a9   : > { %v2721_v26 = vmul.bf16 1065369472, %v3345_v22 }
 0x9ab   : > { %v2722_v7 = vmul.bf16 %v2721_v26, %v2713_v11 }
 0x9ad   : > { %3225 = vmatmul.mubr.bf16.vlgmr.msra.gmra.mxu1 %v2722_v7 }
 0xa6d   : > { %v2821_v53 = vpop.f32.mrf.mxu1 }
 0xa6e   : > { %v2828_v20 = vadd.f32 %v2821_v53, %v3949_v51 }
 0xa6f   : > { %v3226_v49 = vpop.f32.mrf.mxu1 }
 0xa70   : > { %v2836_v13 = vadd.f32 %v2834_v37, %v2828_v20 }
 0xa71   : > { %v2824_v21 = vpop.f32.mrf.mxu1 }
 0xa72   : > { %2838 = vst.msk [vmem:[#allocation2] sm:$0xff] %vm370_vm1, %v2836_v13  ;;  %v2829_v14 = vadd.f32 %v2824_v21, %v3953_v56 }
 0xa73   : > { %v3227_v27 = vpop.f32.mrf.mxu1 }
 0xa74   : > { %v2837_v9 = vadd.f32 %v2834_v37, %v2829_v14 }
 0xa76   : > { %2839 = vst.msk [vmem:[#allocation2 + $0x8] sm:$0xff] %vm370_vm1, %v2837_v9 }
 0xa77   : > { %3362 = shalt.err (!%p3359_p13)
}
 0xa78   : > { %s3415_s18 = smov 128  }
 0xa79   : > { %3229 = dma.vmem_to_hbm [thread:$0]  (%p3994_p6), %s2850_s15, 256, %s4026_s6, [#allocation3], %s3415_s18, %s3415_s18, %s3411_s10  }
 0xa7a   : > { %3386 = dma.done.wait (%p3994_p6), [#allocation3], 256  }
 0xa7b   : > { %3388 = vsyncadd (%p3994_p6), [#allocation3], 4294967040 }
 0xa7c PF: > { %s17_s23 = sadd.s32 1, %s3399_s23   ;;  %s4028_s21 = smov %s3395_s22 }
 0xa7d   : > { %p14_p0 = scmp.ge.s32.totalorder %s17_s23, 4   ;;  %s4029_s22 = smov %s4031_s25 }
 0xa7f   :  { %16 = sbr.rel (!%p14_p0) target bundleno = 2 (0x2), region = 91 }
 0xa84   :  { %2865 = vsyncpa [#allocation3], 1 }
 0xa85   :  { %2867 = vsyncpa [#allocation3 + $0x1], 1 }

</bundles_post_ra>
